<compile_context>
chip_gen: v5e
topology: v5e:2x2
jax: 0.10.0
libtpu: 0.0.40
codegen_flags: <defaults>
</compile_context>

<pallas_src>
import functools

import jax
import jax.numpy as jnp
import numpy as np
from jax import lax
from jax.experimental import pallas as pl
from jax.experimental.pallas import tpu as pltpu


def _vmem_limit_bytes():
    # Per-generation scoped-VMEM limit: ~75% of physical (v5e/v6e 128 MiB -> 96 MiB,
    # v7x 64 MiB -> 48 MiB), clamped to a sane range.
    try:
        phys = int(pltpu.get_tpu_info().vmem_capacity_bytes)
    except Exception:
        phys = 64 * 1024 * 1024
    return int(min(max(phys * 3 // 4, 32 * 1024 * 1024), 100 * 1024 * 1024))


_VMEM_LIMIT = _vmem_limit_bytes()


# ---------------------------------------------------------------------------
# Fused kernel: conv1 -> conv2 -> LayerNorm for one batch element per grid step.
# All activations stay in VMEM / vregs; weights are VMEM-resident across steps.
# ---------------------------------------------------------------------------
def _conv_tokenizer_kernel(x_ref, w1_ref, b1_ref, w2_ref, b2_ref, g_ref, bt_ref,
                           o_ref, y1_ref, *, eps, e_true):
    # x_ref : (1, Ho+1, Wo+1, 16*Cinp) bf16  s2d(4) input, zero halo top/left
    # w1_ref: (4*16*Cinp, 4*C1)        bf16  conv1, 4 shift-taps fused along K
    # b1_ref: (1, 4*C1)                f32   conv1 bias in s2d(2) layout
    # w2_ref: (4*4*C1, Ep)             bf16  conv2, 4 taps fused along K, N lane-padded
    # b2/g/bt: (1, Ep)                 f32   lanes >= e_true are zero
    # o_ref : (1, Ho, Wo, Ep)
    # y1_ref: (Ho+1, Wo+1, 4*C1)       bf16  scratch: conv1 output + zero halo
    _, hp, wp, k1 = x_ref.shape
    ho, wo = hp - 1, wp - 1
    m = ho * wo
    c4 = w1_ref.shape[1]
    ep = w2_ref.shape[1]

    x = x_ref[0]                                             # (Ho+1, Wo+1, 16*Cinp)

    # ---- conv1: stride-2 3x3 == 4 shift-taps over the s2d(4) operand, fused
    #      along K into one bf16 matmul with f32 accumulation.  Output lands
    #      directly in space-to-depth(2) layout (4*C1 channels). ----
    xcat = jnp.concatenate(
        [x[a:a + ho, b:b + wo, :].reshape(m, k1) for a in (0, 1) for b in (0, 1)],
        axis=-1)                                             # (m, 4*16*Cinp) bf16
    acc1 = jnp.dot(xcat, w1_ref[...], preferred_element_type=jnp.float32)
    y1 = (acc1 + b1_ref[...]).astype(jnp.bfloat16)           # (m, 4*C1)

    # ---- y1 halo scratch: zero strips every step (core-sharding safe, tiny),
    #      write interior, so conv2's shifted taps are plain slices. ----
    y1_ref[pl.ds(0, 1), :, :] = jnp.zeros((1, wp, c4), jnp.bfloat16)
    y1_ref[:, pl.ds(0, 1), :] = jnp.zeros((hp, 1, c4), jnp.bfloat16)
    y1_ref[pl.ds(1, ho), pl.ds(1, wo), :] = y1.reshape(ho, wo, c4)
    y1h = y1_ref[...]                                        # (Ho+1, Wo+1, 4*C1)

    # ---- conv2: 4 shift-taps fused along K into one bf16 matmul (N = Ep = 128k). ----
    ycat = jnp.concatenate(
        [y1h[a:a + ho, b:b + wo, :].reshape(m, c4) for a in (0, 1) for b in (0, 1)],
        axis=-1)                                             # (m, 4*4*C1) bf16
    acc2 = jnp.dot(ycat, w2_ref[...], preferred_element_type=jnp.float32)
    y2 = acc2 + b2_ref[...]                                  # (m, Ep) f32, pad lanes 0

    # ---- LayerNorm over the TRUE embed dim (padded lanes masked out of stats). ----
    inv_e = 1.0 / e_true
    mean = jnp.sum(y2, axis=-1, keepdims=True) * inv_e       # pad lanes are exact zeros
    d = y2 - mean
    lane = lax.broadcasted_iota(jnp.int32, (m, ep), 1)
    dm = jnp.where(lane < e_true, d, 0.0)
    var = jnp.sum(dm * dm, axis=-1, keepdims=True) * inv_e
    out = d * lax.rsqrt(var + eps) * g_ref[...] + bt_ref[...]
    o_ref[...] = out.reshape(1, ho, wo, ep).astype(o_ref.dtype)


# ---------------------------------------------------------------------------
# Weight packing: express each stride-2 3x3 conv as 4 shift-taps over a
# space-to-depth operand, with the 4 taps stacked along K (j = (rh+1)*2+(rw+1)).
# ---------------------------------------------------------------------------
def _pack_w1(w1, cin_p):
    # (C1, Cin, 3, 3) -> (4*16*cin_p, 4*C1); K ordered (tap j, ry, rx, c),
    # N ordered (dy, dx, o) == space-to-depth(2) layout of y1.
    c1, cin, _, _ = w1.shape
    wb = jnp.zeros((4, 16 * cin_p, 4 * c1), w1.dtype)
    for dy in range(2):
        for dx in range(2):
            for kh in range(3):
                for kw in range(3):
                    oh, ow = 2 * dy + kh - 1, 2 * dx + kw - 1
                    rh, rw = (-1 if oh < 0 else 0), (-1 if ow < 0 else 0)
                    ry, rx = oh - 4 * rh, ow - 4 * rw
                    j = (rh + 1) * 2 + (rw + 1)
                    k0 = (ry * 4 + rx) * cin_p
                    n0 = (dy * 2 + dx) * c1
                    wb = wb.at[j, k0:k0 + cin, n0:n0 + c1].set(w1[:, :, kh, kw].T)
    return wb.reshape(4 * 16 * cin_p, 4 * c1)


def _pack_w2(w2, ep):
    # (E, C1, 3, 3) -> (4*4*C1, ep); K ordered (tap j, dy, dx, c) matching y1's
    # space-to-depth(2) layout; N lane-padded to ep with zeros.
    e, c1, _, _ = w2.shape
    wb = jnp.zeros((4, 4 * c1, ep), w2.dtype)
    for kh in range(3):
        for kw in range(3):
            rh, dy = ((-1, 1) if kh == 0 else (0, kh - 1))
            rw, dx = ((-1, 1) if kw == 0 else (0, kw - 1))
            j = (rh + 1) * 2 + (rw + 1)
            k0 = (dy * 2 + dx) * c1
            wb = wb.at[j, k0:k0 + c1, :e].set(w2[:, :, kh, kw].T)
    return wb.reshape(16 * c1, ep)


def _pad_lanes(v, ep):
    e = v.shape[0]
    return jnp.zeros((1, ep), jnp.float32).at[0, :e].set(v.astype(jnp.float32))


# ---------------------------------------------------------------------------
# ConvTokenizer forward
# ---------------------------------------------------------------------------
@functools.partial(jax.jit, static_argnames=("eps",))
def conv_tokenizer(x_nchw, params, eps=1e-5):
    w1, b1, w2, b2, gamma, beta = params
    bsz, cin, h, w = x_nchw.shape
    if h % 4 or w % 4:
        # TODO(synk): ceil-mode right/bottom halo for spatial sizes not divisible by 4.
        raise ValueError("H and W must be divisible by 4")
    c1 = w1.shape[0]
    e = w2.shape[0]
    ho, wo = h // 4, w // 4
    cin_p = -(-cin // 4) * 4            # pad Cin to a multiple of 4 (alignment)
    ep = -(-e // 128) * 128             # lane-pad embed_dim to a multiple of 128

    # Single XLA layout pre-pass (bf16): NCHW -> space-to-depth(4) NHWC + 1-px
    # zero halo (top/left), input channels zero-padded to cin_p.
    xs = x_nchw.astype(jnp.bfloat16)
    if cin_p != cin:
        xs = jnp.pad(xs, ((0, 0), (0, cin_p - cin), (0, 0), (0, 0)))
    xs = xs.reshape(bsz, cin_p, ho, 4, wo, 4)
    xs = jnp.transpose(xs, (0, 2, 4, 3, 5, 1)).reshape(bsz, ho, wo, 16 * cin_p)
    xs = jnp.pad(xs, ((0, 0), (1, 0), (1, 0), (0, 0)))

    w1b = _pack_w1(w1, cin_p).astype(jnp.bfloat16)            # (64*cin_p, 4*C1)
    b1b = jnp.tile(b1.astype(jnp.float32), 4).reshape(1, 4 * c1)
    w2b = _pack_w2(w2, ep).astype(jnp.bfloat16)               # (16*C1, Ep)
    b2p, gp, btp = _pad_lanes(b2, ep), _pad_lanes(gamma, ep), _pad_lanes(beta, ep)

    kernel = functools.partial(_conv_tokenizer_kernel, eps=eps, e_true=e)
    out = pl.pallas_call(
        kernel,
        out_shape=jax.ShapeDtypeStruct((bsz, ho, wo, ep), x_nchw.dtype),
        grid=(bsz,),
        in_specs=[
            pl.BlockSpec((1, ho + 1, wo + 1, 16 * cin_p), lambda i: (i, 0, 0, 0)),
            pl.BlockSpec((64 * cin_p, 4 * c1), lambda i: (0, 0)),   # resident
            pl.BlockSpec((1, 4 * c1), lambda i: (0, 0)),            # resident
            pl.BlockSpec((16 * c1, ep), lambda i: (0, 0)),          # resident
            pl.BlockSpec((1, ep), lambda i: (0, 0)),                # resident
            pl.BlockSpec((1, ep), lambda i: (0, 0)),                # resident
            pl.BlockSpec((1, ep), lambda i: (0, 0)),                # resident
        ],
        out_specs=pl.BlockSpec((1, ho, wo, ep), lambda i: (i, 0, 0, 0)),
        scratch_shapes=[pltpu.VMEM((ho + 1, wo + 1, 4 * c1), jnp.bfloat16)],
        compiler_params=pltpu.CompilerParams(
            dimension_semantics=("parallel",),
            vmem_limit_bytes=_VMEM_LIMIT,
        ),
    )(xs, w1b, b1b, w2b, b2p, gp, btp)

    return out[..., :e] if ep != e else out


# ---------------------------------------------------------------------------
# Pure-JAX reference (correctness check).  operand_dtype=bf16 reproduces the
# kernel's deliberate MXU-operand quantization for a tight comparison.
# ---------------------------------------------------------------------------
def conv_tokenizer_ref(x_nchw, params, eps=1e-5, operand_dtype=jnp.float32):
    w1, b1, w2, b2, gamma, beta = params
    dn = ("NCHW", "OIHW", "NCHW")
    y = lax.conv_general_dilated(
        x_nchw.astype(operand_dtype), w1.astype(operand_dtype), (2, 2),
        ((1, 1), (1, 1)), dimension_numbers=dn,
        preferred_element_type=jnp.float32) + b1[None, :, None, None].astype(jnp.float32)
    y = lax.conv_general_dilated(
        y.astype(operand_dtype), w2.astype(operand_dtype), (2, 2),
        ((1, 1), (1, 1)), dimension_numbers=dn,
        preferred_element_type=jnp.float32) + b2[None, :, None, None].astype(jnp.float32)
    y = jnp.transpose(y, (0, 2, 3, 1))
    mean = jnp.mean(y, axis=-1, keepdims=True)
    var = jnp.mean((y - mean) ** 2, axis=-1, keepdims=True)
    return (y - mean) * lax.rsqrt(var + eps) * gamma.astype(jnp.float32) \
        + beta.astype(jnp.float32)


# ---------------------------------------------------------------------------
if __name__ == "__main__":
    def make_params(key, in_chans, embed_dim, dtype):
        c1 = embed_dim // 2
        kw1, kb1, kw2, kb2, kg, kb = jax.random.split(key, 6)
        w1 = jax.random.normal(kw1, (c1, in_chans, 3, 3), dtype) * 0.1
        b1 = jax.random.normal(kb1, (c1,), dtype) * 0.1
        w2 = jax.random.normal(kw2, (embed_dim, c1, 3, 3), dtype) * 0.1
        b2 = jax.random.normal(kb2, (embed_dim,), dtype) * 0.1
        # nn.LayerNorm inits to (1, 0); use perturbed values to exercise the affine path.
        gamma = 1.0 + 0.1 * jax.random.normal(kg, (embed_dim,), dtype)
        beta = 0.1 * jax.random.normal(kb, (embed_dim,), dtype)
        return (w1, b1, w2, b2, gamma, beta)

    key = jax.random.PRNGKey(0)
    configs = [
        dict(batch=2, in_chans=4, hw=32, embed_dim=32),
        dict(batch=1, in_chans=3, hw=32, embed_dim=64),
    ]
    for cfg in configs:
        key, kx, kp = jax.random.split(key, 3)
        x = jax.random.normal(
            kx, (cfg["batch"], cfg["in_chans"], cfg["hw"], cfg["hw"]), jnp.float32)
        params = make_params(kp, cfg["in_chans"], cfg["embed_dim"], jnp.float32)

        out = jax.block_until_ready(conv_tokenizer(x, params))
        assert out.shape == (cfg["batch"], cfg["hw"] // 4, cfg["hw"] // 4,
                             cfg["embed_dim"]), out.shape

        # Tight check against a matched-precision (bf16-operand, f32-accumulate)
        # reference: only summation-order differences remain.
        ref16 = jax.block_until_ready(
            conv_tokenizer_ref(x, params, operand_dtype=jnp.bfloat16))
        np.testing.assert_allclose(np.asarray(out), np.asarray(ref16),
                                   rtol=2e-2, atol=2e-2)

        # Loose check against the full-f32 reference: the tolerance covers the
        # deliberate bf16 quantization of the MXU operands (LN output is O(1)).
        ref32 = jax.block_until_ready(conv_tokenizer_ref(x, params))
        np.testing.assert_allclose(np.asarray(out), np.asarray(ref32),
                                   rtol=2e-1, atol=2e-1)
    print("KERNEL_OK")
</pallas_src>

<mosaic_0001>
module attributes {stable_mosaic.version = 11 : i64} {
  func.func @_conv_tokenizer_kernel(%arg0: i32, %arg1: memref<1x9x9x64xbf16, #tpu.memory_space<vmem>>, %arg2: memref<256x64xbf16, #tpu.memory_space<vmem>>, %arg3: memref<1x64xf32, #tpu.memory_space<vmem>>, %arg4: memref<256x128xbf16, #tpu.memory_space<vmem>>, %arg5: memref<1x128xf32, #tpu.memory_space<vmem>>, %arg6: memref<1x128xf32, #tpu.memory_space<vmem>>, %arg7: memref<1x128xf32, #tpu.memory_space<vmem>>, %arg8: memref<1x8x8x128xf32, #tpu.memory_space<vmem>>, %arg9: memref<9x9x64xbf16, #tpu.memory_space<vmem>>) attributes {dimension_semantics = [#tpu.dimension_semantics<parallel>], iteration_bounds = array<i64: 2>, scalar_prefetch = 0 : i64, scratch_operands = 1 : i64, tpu.core_type = #tpu.core_type<tc>, window_params = [{transform_indices = @transform_0, window_bounds = array<i64: 1, 9, 9, 64>}, {pipeline_mode = #tpu.pipeline_mode<synchronous>, transform_indices = @transform_1, window_bounds = array<i64: 256, 64>}, {pipeline_mode = #tpu.pipeline_mode<synchronous>, transform_indices = @transform_2, window_bounds = array<i64: 1, 64>}, {pipeline_mode = #tpu.pipeline_mode<synchronous>, transform_indices = @transform_3, window_bounds = array<i64: 256, 128>}, {pipeline_mode = #tpu.pipeline_mode<synchronous>, transform_indices = @transform_4, window_bounds = array<i64: 1, 128>}, {pipeline_mode = #tpu.pipeline_mode<synchronous>, transform_indices = @transform_5, window_bounds = array<i64: 1, 128>}, {pipeline_mode = #tpu.pipeline_mode<synchronous>, transform_indices = @transform_6, window_bounds = array<i64: 1, 128>}, {transform_indices = @transform_7, window_bounds = array<i64: 1, 8, 8, 128>}]} {
    %c0 = arith.constant 0 : index
    %c0_0 = arith.constant 0 : index
    %c0_1 = arith.constant 0 : index
    %c0_2 = arith.constant 0 : index
    %0 = vector.load %arg1[%c0, %c0_0, %c0_1, %c0_2] : memref<1x9x9x64xbf16, #tpu.memory_space<vmem>>, vector<1x9x9x64xbf16>
    %1 = vector.shape_cast %0 : vector<1x9x9x64xbf16> to vector<9x9x64xbf16>
    %2 = vector.extract_strided_slice %1 {offsets = [0, 0, 0], sizes = [8, 8, 64], strides = [1, 1, 1]} : vector<9x9x64xbf16> to vector<8x8x64xbf16>
    %3 = vector.shape_cast %2 : vector<8x8x64xbf16> to vector<64x64xbf16>
    %4 = vector.extract_strided_slice %1 {offsets = [0, 1, 0], sizes = [8, 8, 64], strides = [1, 1, 1]} : vector<9x9x64xbf16> to vector<8x8x64xbf16>
    %5 = vector.shape_cast %4 : vector<8x8x64xbf16> to vector<64x64xbf16>
    %6 = vector.extract_strided_slice %1 {offsets = [1, 0, 0], sizes = [8, 8, 64], strides = [1, 1, 1]} : vector<9x9x64xbf16> to vector<8x8x64xbf16>
    %7 = vector.shape_cast %6 : vector<8x8x64xbf16> to vector<64x64xbf16>
    %8 = vector.extract_strided_slice %1 {offsets = [1, 1, 0], sizes = [8, 8, 64], strides = [1, 1, 1]} : vector<9x9x64xbf16> to vector<8x8x64xbf16>
    %9 = vector.shape_cast %8 : vector<8x8x64xbf16> to vector<64x64xbf16>
    %10 = tpu.concatenate %3, %5, %7, %9 in 1 : vector<64x64xbf16>, vector<64x64xbf16>, vector<64x64xbf16>, vector<64x64xbf16> -> vector<64x256xbf16>
    %c0_3 = arith.constant 0 : index
    %c0_4 = arith.constant 0 : index
    %11 = vector.load %arg2[%c0_3, %c0_4] : memref<256x64xbf16, #tpu.memory_space<vmem>>, vector<256x64xbf16>
    %cst = arith.constant dense<0.000000e+00> : vector<64x64xf32>
    %12 = tpu.matmul %10, %11, %cst {dimension_numbers = #tpu.dot_dimension_numbers<[1], [0], [0], [1], [0, 0, 1, 1], [], []>} : vector<64x256xbf16>, vector<256x64xbf16>, vector<64x64xf32> -> vector<64x64xf32>
    %c0_5 = arith.constant 0 : index
    %c0_6 = arith.constant 0 : index
    %13 = vector.load %arg3[%c0_5, %c0_6] : memref<1x64xf32, #tpu.memory_space<vmem>>, vector<1x64xf32>
    %14 = vector.broadcast %13 : vector<1x64xf32> to vector<64x64xf32>
    %15 = arith.addf %12, %14 : vector<64x64xf32>
    %16 = arith.truncf %15 : vector<64x64xf32> to vector<64x64xbf16>
    %cst_7 = arith.constant 0.000000e+00 : bf16
    %17 = vector.broadcast %cst_7 : bf16 to vector<1x9x64xbf16>
    %c0_8 = arith.constant 0 : index
    %c0_9 = arith.constant 0 : index
    %c0_10 = arith.constant 0 : index
    %18 = vector.load %arg9[%c0_8, %c0_9, %c0_10] : memref<9x9x64xbf16, #tpu.memory_space<vmem>>, vector<1x9x64xbf16>
    tpu.vector_store %arg9[%c0_8, %c0_9, %c0_10], %17 {strides = array<i32>} : memref<9x9x64xbf16, #tpu.memory_space<vmem>>, vector<1x9x64xbf16>,
    %cst_11 = arith.constant 0.000000e+00 : bf16
    %19 = vector.broadcast %cst_11 : bf16 to vector<9x1x64xbf16>
    %c0_12 = arith.constant 0 : index
    %c0_13 = arith.constant 0 : index
    %c0_14 = arith.constant 0 : index
    %20 = vector.load %arg9[%c0_12, %c0_13, %c0_14] : memref<9x9x64xbf16, #tpu.memory_space<vmem>>, vector<9x1x64xbf16>
    tpu.vector_store %arg9[%c0_12, %c0_13, %c0_14], %19 {strides = array<i32>} : memref<9x9x64xbf16, #tpu.memory_space<vmem>>, vector<9x1x64xbf16>,
    %21 = vector.shape_cast %16 : vector<64x64xbf16> to vector<8x8x64xbf16>
    %c1 = arith.constant 1 : index
    %c1_15 = arith.constant 1 : index
    %c0_16 = arith.constant 0 : index
    %22 = vector.load %arg9[%c1, %c1_15, %c0_16] : memref<9x9x64xbf16, #tpu.memory_space<vmem>>, vector<8x8x64xbf16>
    tpu.vector_store %arg9[%c1, %c1_15, %c0_16], %21 {strides = array<i32>} : memref<9x9x64xbf16, #tpu.memory_space<vmem>>, vector<8x8x64xbf16>,
    %c0_17 = arith.constant 0 : index
    %c0_18 = arith.constant 0 : index
    %c0_19 = arith.constant 0 : index
    %23 = vector.load %arg9[%c0_17, %c0_18, %c0_19] : memref<9x9x64xbf16, #tpu.memory_space<vmem>>, vector<9x9x64xbf16>
    %24 = vector.extract_strided_slice %23 {offsets = [0, 0, 0], sizes = [8, 8, 64], strides = [1, 1, 1]} : vector<9x9x64xbf16> to vector<8x8x64xbf16>
    %25 = vector.shape_cast %24 : vector<8x8x64xbf16> to vector<64x64xbf16>
    %26 = vector.extract_strided_slice %23 {offsets = [0, 1, 0], sizes = [8, 8, 64], strides = [1, 1, 1]} : vector<9x9x64xbf16> to vector<8x8x64xbf16>
    %27 = vector.shape_cast %26 : vector<8x8x64xbf16> to vector<64x64xbf16>
    %28 = vector.extract_strided_slice %23 {offsets = [1, 0, 0], sizes = [8, 8, 64], strides = [1, 1, 1]} : vector<9x9x64xbf16> to vector<8x8x64xbf16>
    %29 = vector.shape_cast %28 : vector<8x8x64xbf16> to vector<64x64xbf16>
    %30 = vector.extract_strided_slice %23 {offsets = [1, 1, 0], sizes = [8, 8, 64], strides = [1, 1, 1]} : vector<9x9x64xbf16> to vector<8x8x64xbf16>
    %31 = vector.shape_cast %30 : vector<8x8x64xbf16> to vector<64x64xbf16>
    %32 = tpu.concatenate %25, %27, %29, %31 in 1 : vector<64x64xbf16>, vector<64x64xbf16>, vector<64x64xbf16>, vector<64x64xbf16> -> vector<64x256xbf16>
    %c0_20 = arith.constant 0 : index
    %c0_21 = arith.constant 0 : index
    %33 = vector.load %arg4[%c0_20, %c0_21] : memref<256x128xbf16, #tpu.memory_space<vmem>>, vector<256x128xbf16>
    %cst_22 = arith.constant dense<0.000000e+00> : vector<64x128xf32>
    %34 = tpu.matmul %32, %33, %cst_22 {dimension_numbers = #tpu.dot_dimension_numbers<[1], [0], [0], [1], [0, 0, 1, 1], [], []>} : vector<64x256xbf16>, vector<256x128xbf16>, vector<64x128xf32> -> vector<64x128xf32>
    %c0_23 = arith.constant 0 : index
    %c0_24 = arith.constant 0 : index
    %35 = vector.load %arg5[%c0_23, %c0_24] : memref<1x128xf32, #tpu.memory_space<vmem>>, vector<1x128xf32>
    %36 = vector.broadcast %35 : vector<1x128xf32> to vector<64x128xf32>
    %37 = arith.addf %34, %36 : vector<64x128xf32>
    %cst_25 = arith.constant dense<0.000000e+00> : vector<64xf32>
    %38 = vector.multi_reduction <add>, %37, %cst_25 [1] : vector<64x128xf32> to vector<64xf32>
    %39 = vector.shape_cast %38 : vector<64xf32> to vector<64x1xf32>
    %cst_26 = arith.constant 3.125000e-02 : f32
    %40 = vector.broadcast %cst_26 : f32 to vector<64x1xf32>
    %41 = arith.mulf %39, %40 : vector<64x1xf32>
    %42 = vector.broadcast %41 : vector<64x1xf32> to vector<64x128xf32>
    %43 = arith.subf %37, %42 : vector<64x128xf32>
    %44 = tpu.iota {dimensions = array<i32: 1>} : vector<64x128xi32>
    %c32_i32 = arith.constant 32 : i32
    %45 = vector.broadcast %c32_i32 : i32 to vector<64x128xi32>
    %46 = arith.cmpi slt, %44, %45 : vector<64x128xi32>
    %cst_27 = arith.constant 0.000000e+00 : f32
    %47 = vector.broadcast %cst_27 : f32 to vector<64x128xf32>
    %48 = arith.select %46, %43, %47 : vector<64x128xi1>, vector<64x128xf32>
    %49 = arith.mulf %48, %48 : vector<64x128xf32>
    %cst_28 = arith.constant dense<0.000000e+00> : vector<64xf32>
    %50 = vector.multi_reduction <add>, %49, %cst_28 [1] : vector<64x128xf32> to vector<64xf32>
    %51 = vector.shape_cast %50 : vector<64xf32> to vector<64x1xf32>
    %cst_29 = arith.constant 3.125000e-02 : f32
    %52 = vector.broadcast %cst_29 : f32 to vector<64x1xf32>
    %53 = arith.mulf %51, %52 : vector<64x1xf32>
    %cst_30 = arith.constant 9.99999974E-6 : f32
    %54 = vector.broadcast %cst_30 : f32 to vector<64x1xf32>
    %55 = arith.addf %53, %54 : vector<64x1xf32>
    %56 = math.rsqrt %55 : vector<64x1xf32>
    %57 = vector.broadcast %56 : vector<64x1xf32> to vector<64x128xf32>
    %58 = arith.mulf %43, %57 : vector<64x128xf32>
    %c0_31 = arith.constant 0 : index
    %c0_32 = arith.constant 0 : index
    %59 = vector.load %arg6[%c0_31, %c0_32] : memref<1x128xf32, #tpu.memory_space<vmem>>, vector<1x128xf32>
    %60 = vector.broadcast %59 : vector<1x128xf32> to vector<64x128xf32>
    %61 = arith.mulf %58, %60 : vector<64x128xf32>
    %c0_33 = arith.constant 0 : index
    %c0_34 = arith.constant 0 : index
    %62 = vector.load %arg7[%c0_33, %c0_34] : memref<1x128xf32, #tpu.memory_space<vmem>>, vector<1x128xf32>
    %63 = vector.broadcast %62 : vector<1x128xf32> to vector<64x128xf32>
    %64 = arith.addf %61, %63 : vector<64x128xf32>
    %65 = vector.shape_cast %64 : vector<64x128xf32> to vector<1x8x8x128xf32>
    %c0_35 = arith.constant 0 : index
    %c0_36 = arith.constant 0 : index
    %c0_37 = arith.constant 0 : index
    %c0_38 = arith.constant 0 : index
    %66 = vector.load %arg8[%c0_35, %c0_36, %c0_37, %c0_38] : memref<1x8x8x128xf32, #tpu.memory_space<vmem>>, vector<1x8x8x128xf32>
    tpu.vector_store %arg8[%c0_35, %c0_36, %c0_37, %c0_38], %65 {strides = array<i32>} : memref<1x8x8x128xf32, #tpu.memory_space<vmem>>, vector<1x8x8x128xf32>,
    return
  }
  func.func @transform_0(%arg0: i32) -> (i32, i32, i32, i32) {
    %c0_i32 = arith.constant 0 : i32
    %c0_i32_0 = arith.constant 0 : i32
    %c0_i32_1 = arith.constant 0 : i32
    %c0_i32_2 = arith.constant 0 : i32
    return %arg0, %c0_i32, %c0_i32_0, %c0_i32_1 : i32, i32, i32, i32
  }
  func.func @transform_1(%arg0: i32) -> (i32, i32) {
    %c0_i32 = arith.constant 0 : i32
    %c0_i32_0 = arith.constant 0 : i32
    %c0_i32_1 = arith.constant 0 : i32
    return %c0_i32, %c0_i32_0 : i32, i32
  }
  func.func @transform_2(%arg0: i32) -> (i32, i32) {
    %c0_i32 = arith.constant 0 : i32
    %c0_i32_0 = arith.constant 0 : i32
    %c0_i32_1 = arith.constant 0 : i32
    return %c0_i32, %c0_i32_0 : i32, i32
  }
  func.func @transform_3(%arg0: i32) -> (i32, i32) {
    %c0_i32 = arith.constant 0 : i32
    %c0_i32_0 = arith.constant 0 : i32
    %c0_i32_1 = arith.constant 0 : i32
    return %c0_i32, %c0_i32_0 : i32, i32
  }
  func.func @transform_4(%arg0: i32) -> (i32, i32) {
    %c0_i32 = arith.constant 0 : i32
    %c0_i32_0 = arith.constant 0 : i32
    %c0_i32_1 = arith.constant 0 : i32
    return %c0_i32, %c0_i32_0 : i32, i32
  }
  func.func @transform_5(%arg0: i32) -> (i32, i32) {
    %c0_i32 = arith.constant 0 : i32
    %c0_i32_0 = arith.constant 0 : i32
    %c0_i32_1 = arith.constant 0 : i32
    return %c0_i32, %c0_i32_0 : i32, i32
  }
  func.func @transform_6(%arg0: i32) -> (i32, i32) {
    %c0_i32 = arith.constant 0 : i32
    %c0_i32_0 = arith.constant 0 : i32
    %c0_i32_1 = arith.constant 0 : i32
    return %c0_i32, %c0_i32_0 : i32, i32
  }
  func.func @transform_7(%arg0: i32) -> (i32, i32, i32, i32) {
    %c0_i32 = arith.constant 0 : i32
    %c0_i32_0 = arith.constant 0 : i32
    %c0_i32_1 = arith.constant 0 : i32
    %c0_i32_2 = arith.constant 0 : i32
    return %arg0, %c0_i32, %c0_i32_0, %c0_i32_1 : i32, i32, i32, i32
  }
}

</mosaic_0001>

<bundles_post_ra>
// kernel: tile.8
= control target key start
LH: loop header
LB: loop body
LE: loop exit
PB: predicated region body
PF: predicated region fallthrough
CT: control target
= control target key end

     0   :  { %s22_s0 = inlined_call_operand.vmem [shape: f32[16], index: 0, kind: input, shape index: {}]   ;;  %s23_s1 = inlined_call_operand.vmem [shape: f32[4,16], index: 1, kind: output, shape index: {}]  }
   0x1   :  { %v4_v0 = vld [vmem:[%s22_s0] ss:$0 sm:$0xff] }
   0x2   :  { %5 = vst [vmem:[%s23_s1] sm:$0xf] %v4_v0 }

// kernel: tile.9
= control target key start
LH: loop header
LB: loop body
LE: loop exit
PB: predicated region body
PF: predicated region fallthrough
CT: control target
= control target key end

     0   :  { %s37_s8 = smov 16   ;;  %s38_s9 = smov 32   ;;  %vm7_vm0 = vcmask 130048   ;;  %vm13_vm1 = vcmask 523648   ;;  %vm19_vm2 = vcmask 392448   ;;  %vm25_vm3 = vcmask 261248   ;;  %s55_s0 = inlined_call_operand.vmem [shape: f32[4,16], index: 0, kind: input, shape index: {}]   ;;  %s56_s1 = inlined_call_operand.vmem [shape: f32[1,64], index: 1, kind: output, shape index: {}]  }
   0x1   :  { %v4_v0 = vld [vmem:[%s55_s0] sm:$0xf]  ;;  %s36_s0 = smov 48  }
   0x2   :  { %5 = vst [vmem:[#allocation1] sm:$0xf] %v4_v0 }
   0x9   :  { %v10_v1 = vld [vmem:[#allocation1 + $0x3] sm:$0x1]   ;;  %v22_v2 = vld [vmem:[#allocation1 + $0x1] sm:$0x1]   ;;  %v16_v3 = vld [vmem:[#allocation1 + $0x2] sm:$0x1]  }
   0xa   :  { %11 = vrot.lane.b32.xlu0 %v10_v1, %s36_s0  ;;  %23 = vrot.lane.b32.xlu1 %v22_v2, %s37_s8  ;;  %v6_v4 = vld [vmem:[#allocation1] sm:$0x1]  }
   0xb   :  { %8 = vst.msk [vmem:[#allocation0] sm:$0x1] %vm7_vm0, %v6_v4  }
  0x12   :  { %17 = vrot.lane.b32.xlu0 %v16_v3, %s38_s9 }
  0x7c   :  { %v12_v5 = vpop.permute.xlu0 %11   ;;  %v24_v6 = vpop.permute.xlu1 %23  }
  0x7d   :  { %14 = vst.msk [vmem:[#allocation0] sm:$0x1] %vm13_vm1, %v12_v5  }
  0x84   :  { %v18_v7 = vpop.permute.xlu0 %17  }
  0x85   :  { %20 = vst.msk [vmem:[#allocation0] sm:$0x1] %vm19_vm2, %v18_v7  }
  0x86   :  { %26 = vst.msk [vmem:[#allocation0] sm:$0x1] %vm25_vm3, %v24_v6  }
  0x8d   :  { %v29_v8 = vld [vmem:[#allocation0] sm:$0x1] }
  0x8e   :  { %32 = vst [vmem:[%s56_s1] sm:$0x1] %v29_v8 }

// kernel: conv_tokenizer.1
= control target key start
LH: loop header
LB: loop body
LE: loop exit
PB: predicated region body
PF: predicated region fallthrough
CT: control target
= control target key end

     0   :  { %12 = vsyncpa [#allocation4], 0  ;;  %s2436_s0 = inlined_call_operand.vmem [shape: bf16[2,9,9,64], index: 0, kind: input, shape index: {}]   ;;  %s2437_s1 = inlined_call_operand.vmem [shape: bf16[256,64], index: 1, kind: input, shape index: {}]   ;;  %s2438_s2 = inlined_call_operand.vmem [shape: f32[1,64], index: 2, kind: input, shape index: {}]   ;;  %s2439_s3 = inlined_call_operand.vmem [shape: bf16[256,128], index: 3, kind: input, shape index: {}]   ;;  %s2440_s4 = inlined_call_operand.vmem [shape: f32[1,128], index: 4, kind: input, shape index: {}]   ;;  %s2441_s5 = inlined_call_operand.vmem [shape: f32[1,128], index: 5, kind: input, shape index: {}]   ;;  %s2442_s6 = inlined_call_operand.vmem [shape: f32[1,128], index: 6, kind: input, shape index: {}]   ;;  %s2443_s7 = inlined_call_operand.hbm [shape: f32[2,8,8,128], index: 7, kind: output, shape index: {}]  }
   0x1   :  { %14 = vsyncpa [#allocation4 + $0x1], 0  ;;  %s1932_s24 = smov 0   ;;  %s1934_s25 = smov 0  }
   0x2   :  { %s1936_s26 = smov 0   ;;  %s1938_s27 = smov 0  }
   0x3 LB: > { %s1953_s28 = sadd.s32 4294967295, %s1886_s27   ;;  %s1588_s29 = sadd.s32 4294967294, %s1886_s27   ;;  %s1886_s27 = sphi %s1938_s27, %s2455_s27   ;;  %s1882_s26 = sphi %s1936_s26, %s2454_s26   ;;  %s1878_s25 = sphi %s1934_s25, %s2453_s25   ;;  %s1874_s24 = sphi %s1932_s24, %s2452_s24  }
   0x4   : > { %s1957_s30 = sadd.s32 1, %s1886_s27   ;;  %s179_s8 = sadd.s32 1, %s1882_s26 }
   0x5   : > { %s176_s9 = ssub.s32 %s1886_s27, %s1957_s30  ;;  %p189_p0 = scmp.ne.s32.totalorder %s1882_s26, %s1878_s25 }
   0x6   : > { %p177_p1 = scmp.eq.s32.totalorder %s176_s9, 0  ;;  %p190_p2 = scmp.eq.s32.totalorder %s1953_s28, 1 }
   0x7   : > { %p195_p3 = scmp.ne.s32.totalorder %s1878_s25, %s1874_s24  ;;  %p196_p4 = scmp.eq.s32.totalorder %s1588_s29, 1 }
   0x8   : > { %s1968_s10 = scalar_select %p177_p1, %s1882_s26, %s179_s8  }
   0x9   : > { %p1970_p5 = por %p190_p2, %p189_p0  ;;  %p1974_p6 = por %p196_p4, %p195_p3 }
   0xa   : > { %p1591_p7 = scmp.ge.s32.totalorder %s1886_s27, 1  ;;  %p240_p8 = scmp.lt.s32.totalorder %s1886_s27, 3 }
   0xc   : > { %p241_p9 = pnand %p1591_p7, %p240_p8 }
   0xd   : > { %p272_p10 = scmp.lt.s32.totalorder (!%p241_p9), %s1953_s28, 1  ;;  %s269_s20 = sand.u32 (!%p241_p9), 1, %s1878_s25  }
   0xe   : > { %244 = sbr.rel (%p241_p9) target bundleno = 906 (0x38a), region = 48  ;;  %s1592_s29 = sshll.u32 (!%p241_p9), %s269_s20, 6 }
   0xf   : > { %s2371_s8 = scalar_lea.vmem (!%p241_p9), [#allocation3], %s1592_s29  ;;  %s1759_s9 = sshll.u32 (!%p241_p9), %s1953_s28, 6 }
  0x10   : > { %s1522_s16 = scalar_lea.hbm (!%p241_p9), %s2443_s7, %s1759_s9  ;;  %s1523_s18 = sshll.u32 (!%p241_p9), %s2371_s8, 4  ;;  %s1524_s18 = int_to_ptr.vmem [resolvable:$true] %s1523_s18 }
  0x11   : > { %s1511_s19 = scalar_lea.sflag (!%p241_p9), [#allocation4], %s269_s20 }
  0x13   : > { %s273_s13 = scalar_select %p272_p10, %s1953_s28, 1  ;;  %vm296_vm0 = vsmask.f32 3328  ;;  %vm297_vm1 = vsmask.f32 7440  ;;  %v1734_v33 = vld [vmem:[%s2437_s1 + $0x38] sm:$0xff] }
  0x14   : > { %vm2016_vm2 = vmor %vm296_vm0, %vm297_vm1  ;;  %649 = vmatpush.bf16.msra.mxu0 %v1734_v33  ;;  %v1733_v42 = vld [vmem:[%s2437_s1 + $0x30] sm:$0xff]  ;;  %v1732_v62 = vld [vmem:[%s2437_s1 + $0x28] sm:$0xff]  ;;  %vm484_vm3 = vcmask 523264   ;;  %vm717_vm4 = vcmask 516096   ;;  %vm718_vm5 = vsmask.f32 256 }
  0x15   : > { %s1760_s14 = smul.u32 72, %s273_s13  ;;  %v1742_v63 = vld [vmem:[%s2437_s1 + $0x78] sm:$0xff]  ;;  %vm2142_vm6 = vmand %vm717_vm4, %vm718_vm5  ;;  %vm715_vm7 = vcmask 519168   ;;  %vm832_vm8 = vsmask.f32 7938  ;;  %v1756_v27 = vld [vmem:[%s2439_s3 + $0x68] sm:$0xff] }
  0x16   : > { %678 = vmatpush.bf16.msra.mxu1 %v1742_v63  ;;  %vm2169_vm9 = vmand %vm715_vm7, %vm832_vm8  ;;  %s1525_s28 = sshll.u32 %s1522_s16, 4  ;;  %s1526_s28 = int_to_ptr.hbm [resolvable:$true] %s1525_s28 }
  0x17   : > { %s1985_s17 = scalar_lea.vmem %s2436_s0, %s1760_s14  ;;  %s1888_s14 = smov 64  }
  0x18   : > { %v1988_v0 = vld [vmem:[%s1985_s17] sm:$0xf]  ;;  %v279_v1 = vld [vmem:[%s1985_s17 + $0x4] sm:$0x1]  ;;  %v1992_v2 = vld [vmem:[%s1985_s17 + $0x8] sm:$0xf]  ;;  %650 = vmatpush.bf16.msra.mxu0 %v1733_v42 }
  0x19   : > { %v281_v3 = vld [vmem:[%s1985_s17 + $0xc] sm:$0x1]  ;;  %v300_v4 = vshrl.u32 %v1988_v0, 16  ;;  %v303_v5 = vshll.u32 %v1988_v0, 16  ;;  %v309_v6 = vshll.u32 %v279_v1, 16  ;;  %v314_v7 = vshrl.u32 %v1992_v2, 16 }
  0x1a   : > { %v317_v8 = vshll.u32 %v1992_v2, 16  ;;  %v323_v9 = vshll.u32 %v281_v3, 16  ;;  %v2000_v10 = vld [vmem:[%s1985_s17 + $0x10] sm:$0xf]  ;;  %v283_v11 = vld [vmem:[%s1985_s17 + $0x14] sm:$0x1] }
  0x1b   : > { %v302_v12 = vrot.slane %v300_v4, 4  ;;  %v305_v13 = vrot.slane %v303_v5, 5  ;;  %v311_v14 = vrot.slane %v309_v6, 5  ;;  %v316_v15 = vrot.slane %v314_v7, 4  ;;  %v2004_v16 = vld [vmem:[%s1985_s17 + $0x18] sm:$0xf] }
  0x1c   : > { %v319_v17 = vrot.slane %v317_v8, 5  ;;  %v325_v18 = vrot.slane %v323_v9, 5  ;;  %v328_v19 = vshrl.u32 %v2000_v10, 16  ;;  %v331_v20 = vshll.u32 %v2000_v10, 16  ;;  %v285_v21 = vld [vmem:[%s1985_s17 + $0x1c] sm:$0x1]  ;;  %651 = vmatpush.bf16.msra.mxu0 %v1732_v62 }
  0x1d   : > { %v306_v22 = vor.u32 %v305_v13, %v302_v12  ;;  %v337_v23 = vshll.u32 %v283_v11, 16  ;;  %v342_v24 = vshrl.u32 %v2004_v16, 16  ;;  %v345_v25 = vshll.u32 %v2004_v16, 16  ;;  %v2012_v26 = vld [vmem:[%s1985_s17 + $0x20] sm:$0xf]  ;;  %v1741_v13 = vld [vmem:[%s2437_s1 + $0x70] sm:$0xff] }
  0x1e   : > { %v320_v28 = vor.u32 %v319_v17, %v316_v15  ;;  %v330_v29 = vrot.slane %v328_v19, 4  ;;  %v333_v30 = vrot.slane %v331_v20, 5  ;;  %v351_v31 = vshll.u32 %v285_v21, 16  ;;  %v287_v32 = vld [vmem:[%s1985_s17 + $0x24] sm:$0x1]  ;;  %679 = vmatpush.bf16.msra.mxu1 %v1741_v13 }
  0x1f   : > { %v307_v34 = vrot.slane %v306_v22, 4  ;;  %v339_v35 = vrot.slane %v337_v23, 5  ;;  %v344_v36 = vrot.slane %v342_v24, 4  ;;  %v347_v37 = vrot.slane %v345_v25, 5  ;;  %v2032_v47 = vld [vmem:[%s1985_s17 + $0x30] sm:$0xf] }
  0x20   : > { %v321_v38 = vrot.slane %v320_v28, 4  ;;  %v334_v39 = vor.u32 %v333_v30, %v330_v29  ;;  %v353_v40 = vrot.slane %v351_v31, 5  ;;  %v356_v41 = vshrl.u32 %v2012_v26, 16  ;;  %v291_v48 = vld [vmem:[%s1985_s17 + $0x34] sm:$0x1]  ;;  %v1731_v25 = vld [vmem:[%s2437_s1 + $0x20] sm:$0xff] }
  0x21   : > { %v312_v43 = vsel %vm2016_vm2, %v307_v34, %v311_v14  ;;  %v348_v44 = vor.u32 %v347_v37, %v344_v36  ;;  %v359_v45 = vshll.u32 %v2012_v26, 16  ;;  %v365_v46 = vshll.u32 %v287_v32, 16  ;;  %v2040_v57 = vld [vmem:[%s1985_s17 + $0x38] sm:$0xf]  ;;  %v293_v6 = vld [vmem:[%s1985_s17 + $0x3c] sm:$0x1]  ;;  %652 = vmatpush.bf16.msra.mxu0 %v1731_v25 }
  0x22   : > { %v326_v49 = vsel %vm2016_vm2, %v321_v38, %v325_v18  ;;  %v445_v50 = vunpack.c.l.b16 %v312_v43  ;;  %v335_v51 = vrot.slane %v334_v39, 4  ;;  %v358_v52 = vrot.slane %v356_v41, 4  ;;  %v2057_v7 = vld [vmem:[%s1985_s17 + $0x28] sm:$0xf]  ;;  %v289_v19 = vld [vmem:[%s1985_s17 + $0x2c] sm:$0x1] }
  0x23   : > { %v2037_v53 = vunpack.c.l.b16 %v326_v49  ;;  %v349_v54 = vrot.slane %v348_v44, 4  ;;  %v361_v55 = vrot.slane %v359_v45, 5  ;;  %v367_v56 = vrot.slane %v365_v46, 5  ;;  %v2069_v24 = vld [vmem:[%s1985_s17 + $0x40] sm:$0xf]  ;;  %v1740_v37 = vld [vmem:[%s2437_s1 + $0x68] sm:$0xff] }
  0x24   : > { %v340_v58 = vsel %vm2016_vm2, %v335_v51, %v339_v35  ;;  %v384_v59 = vshrl.u32 %v2032_v47, 16  ;;  %v387_v60 = vshll.u32 %v2032_v47, 16  ;;  %v393_v61 = vshll.u32 %v291_v48, 16  ;;  %v295_v32 = vld [vmem:[%s1985_s17 + $0x44] sm:$0x1]  ;;  %v1730_v45 = vld [vmem:[%s2437_s1 + $0x18] sm:$0xff]  ;;  %680 = vmatpush.bf16.msra.mxu1 %v1740_v37 }
  0x25   : > { %v453_v1 = vpack.c.b16 %v2037_v53, %v445_v50  ;;  %v447_v3 = vunpack.c.l.b16 %v340_v58  ;;  %v354_v4 = vsel %vm2016_vm2, %v349_v54, %v353_v40  ;;  %v362_v5 = vor.u32 %v361_v55, %v358_v52  ;;  %653 = vmatpush.bf16.msra.mxu0 %v1730_v45  ;;  %v1727_v13 = vld [vmem:[%s2437_s1] sm:$0xff]  ;;  %s1838_s17 = sshra.s32 %s1526_s28, 4  ;;  %s1839_s17 = int_to_ptr.hbm [resolvable:$true] %s1838_s17 }
  0x26   : > { %v448_v8 = vunpack.c.l.b16 %v354_v4  ;;  %v386_v9 = vrot.slane %v384_v59, 4  ;;  %v389_v11 = vrot.slane %v387_v60, 5  ;;  %v395_v12 = vrot.slane %v393_v61, 5  ;;  %v1729_v61 = vld [vmem:[%s2437_s1 + $0x10] sm:$0xff]  ;;  %s1840_s21 = scalar_lea.hbm %s1839_s17, 64  ;;  %p1845_p0 = scmp.lt.s32.totalorder %s1839_s17, %s2443_s7 }
  0x27   : > { %457 = vrot.lane.b32.xlu0 %v453_v1, %s1888_s14  ;;  %v472_v14 = vpack.c.b16 %v447_v3, %v2037_v53  ;;  %v363_v15 = vrot.slane %v362_v5, 4  ;;  %v398_v17 = vshrl.u32 %v2040_v57, 16  ;;  %v401_v18 = vshll.u32 %v2040_v57, 16  ;;  %v1739_v53 = vld [vmem:[%s2437_s1 + $0x60] sm:$0xff]  ;;  %p1841_p11 = scmp.ne.s32.totalorder %s1839_s17, %s1840_s21 }
  0x28   : > { %v454_v20 = vpack.c.b16 %v448_v8, %v447_v3  ;;  %v390_v21 = vor.u32 %v389_v11, %v386_v9  ;;  %v407_v22 = vshll.u32 %v293_v6, 16  ;;  %v370_v23 = vshrl.u32 %v2057_v7, 16  ;;  %681 = vmatpush.bf16.msra.mxu1 %v1739_v53  ;;  %v1738_v3 = vld [vmem:[%s2437_s1 + $0x58] sm:$0xff]  ;;  %v1737_v11 = vld [vmem:[%s2437_s1 + $0x50] sm:$0xff] }
  0x29   : > { %v368_v28 = vsel %vm2016_vm2, %v363_v15, %v367_v56  ;;  %v400_v29 = vrot.slane %v398_v17, 4  ;;  %v403_v30 = vrot.slane %v401_v18, 5  ;;  %v373_v31 = vshll.u32 %v2057_v7, 16  ;;  %654 = vmatpush.bf16.msra.mxu0 %v1729_v61  ;;  %v1736_v15 = vld [vmem:[%s2437_s1 + $0x48] sm:$0xff]  ;;  %v1735_v17 = vld [vmem:[%s2437_s1 + $0x40] sm:$0xff]  ;;  %p1842_p12 = pnand %p1841_p11, %p1970_p5 }
  0x2a   : > { %459 = vrot.lane.b32.xlu1 %v454_v20, %s1888_s14  ;;  %v449_v33 = vunpack.c.l.b16 %v368_v28  ;;  %v391_v34 = vrot.slane %v390_v21, 4  ;;  %v409_v35 = vrot.slane %v407_v22, 5  ;;  %v372_v36 = vrot.slane %v370_v23, 4  ;;  %v2160_v61 = vld [vmem:[%s2438_s2] ss:$0 sm:$0xff] }
  0x2b   : > { %v404_v38 = vor.u32 %v403_v30, %v400_v29  ;;  %v375_v39 = vrot.slane %v373_v31, 5  ;;  %v379_v40 = vshll.u32 %v289_v19, 16  ;;  %v412_v41 = vshrl.u32 %v2069_v24, 16  ;;  %p1843_p13 = pneg %p1842_p12 }
  0x2c   : > { %v396_v42 = vsel %vm2016_vm2, %v391_v34, %v395_v12  ;;  %v415_v43 = vshll.u32 %v2069_v24, 16  ;;  %v421_v44 = vshll.u32 %v295_v32, 16  ;;  %v473_v50 = vpack.c.b16 %v449_v33, %v448_v8  ;;  %v1728_v8 = vld [vmem:[%s2437_s1 + $0x8] sm:$0xff]  ;;  %682 = vmatpush.bf16.msra.mxu1 %v1738_v3 }
  0x2d   : > { %v405_v46 = vrot.slane %v404_v38, 4  ;;  %v376_v48 = vor.u32 %v375_v39, %v372_v36  ;;  %v381_v49 = vrot.slane %v379_v40, 5  ;;  %v414_v51 = vrot.slane %v412_v41, 4  ;;  %655 = vmatpush.bf16.msra.mxu0 %v1728_v8 }
  0x2e   : > { %v417_v52 = vrot.slane %v415_v43, 5  ;;  %v451_v55 = vunpack.c.l.b16 %v396_v42  ;;  %v423_v60 = vrot.slane %v421_v44, 5  ;;  %v433_v18 = vunpack.c.l.b16 %v1988_v0 }
  0x2f   : > { %476 = vrot.lane.b32.xlu0 %v472_v14, %s1888_s14  ;;  %v410_v54 = vsel %vm2016_vm2, %v405_v46, %v409_v35  ;;  %v377_v56 = vrot.slane %v376_v48, 4  ;;  %v434_v19 = vunpack.c.l.b16 %v1992_v2  ;;  %v435_v23 = vunpack.c.l.b16 %v2000_v10 }
  0x30   : > { %v452_v58 = vunpack.c.l.b16 %v410_v54  ;;  %v418_v59 = vor.u32 %v417_v52, %v414_v51  ;;  %683 = vmatpush.bf16.msra.mxu1 %v1737_v11  ;;  %v436_v28 = vunpack.c.l.b16 %v2004_v16  ;;  %v437_v2 = vunpack.c.l.b16 %v2012_v26  ;;  %v729_v52 = vld [vmem:[#allocation2 + $0x10] sm:$0x1]  ;;  %v720_v54 = vld [vmem:[#allocation2 + $0x4] sm:$0x1] }
  0x31   : > { %v382_v62 = vsel %vm2016_vm2, %v377_v56, %v381_v49  ;;  %656 = vmatpush.bf16.msra.mxu0 %v1727_v13  ;;  %v441_v20 = vpack.c.b16 %v434_v19, %v433_v18  ;;  %v467_v25 = vpack.c.b16 %v435_v23, %v434_v19  ;;  %v438_v10 = vunpack.c.l.b16 %v2057_v7  ;;  %v732_v56 = vld [vmem:[#allocation2 + $0x18] sm:$0x1] }
  0x32   : > { %478 = vrot.lane.b32.xlu1 %v473_v50, %s1888_s14  ;;  %v450_v63 = vunpack.c.l.b16 %v382_v62  ;;  %v419_v1 = vrot.slane %v418_v59, 4  ;;  %v456_v4 = vpack.c.b16 %v452_v58, %v451_v55  ;;  %v442_v32 = vpack.c.b16 %v436_v28, %v435_v23 }
  0x33   : > { %v443_v16 = vpack.c.b16 %v438_v10, %v437_v2  ;;  %v439_v38 = vunpack.c.l.b16 %v2032_v47  ;;  %v440_v26 = vunpack.c.l.b16 %v2040_v57  ;;  %v466_v7 = vunpack.c.l.b16 %v2069_v24  ;;  %v726_v57 = vld [vmem:[#allocation2 + $0x8] sm:$0x1] }
  0x34   : > { %v455_v5 = vpack.c.b16 %v450_v63, %v449_v33  ;;  %v424_v6 = vsel %vm2016_vm2, %v419_v1, %v423_v60  ;;  %v474_v14 = vpack.c.b16 %v451_v55, %v450_v63  ;;  %684 = vmatpush.bf16.msra.mxu1 %v1736_v15  ;;  %v468_v33 = vpack.c.b16 %v437_v2, %v436_v28  ;;  %v735_v60 = vld [vmem:[#allocation2 + $0x20] sm:$0x1] }
  0x35   : > { %v471_v9 = vunpack.c.l.b16 %v424_v6  ;;  %v469_v39 = vpack.c.b16 %v439_v38, %v438_v10  ;;  %v444_v42 = vpack.c.b16 %v440_v26, %v439_v38  ;;  %v470_v45 = vpack.c.b16 %v466_v7, %v440_v26 }
  0x36   : > { %461 = vrot.lane.b32.xlu2 %v455_v5, %s1888_s14  ;;  %v727_v49 = vsel %vm2142_vm6, 0, %v726_v57  ;;  %v1889_v50 = vmov 0   ;;  %v730_v53 = vsel %vm2142_vm6, 0, %v729_v52  ;;  %v721_v55 = vsel %vm2142_vm6, 0, %v720_v54  ;;  %v738_v5 = vld [vmem:[#allocation2 + $0x28] sm:$0x1] }
  0x37   : > { %463 = vrot.lane.b32.xlu0 %v456_v4, %s1888_s14  ;;  %v475_v12 = vpack.c.b16 %v471_v9, %v452_v58  ;;  %716 = vst.msk [vmem:[#allocation2] sm:$0xf] %vm715_vm7, %v1889_v50  ;;  %v733_v58 = vsel %vm2142_vm6, 0, %v732_v56  ;;  %v736_v62 = vsel %vm2142_vm6, 0, %v735_v60  ;;  %v739_v8 = vsel %vm2142_vm6, 0, %v738_v5 }
  0x38   : > { %685 = vmatpush.bf16.msra.mxu1 %v1735_v17  ;;  %728 = vst [vmem:[#allocation2 + $0x8] sm:$0x1] %v727_v49 }
  0x39   : > { %731 = vst [vmem:[#allocation2 + $0x10] sm:$0x1] %v730_v53 }
  0x3a   : > { %482 = vrot.lane.b32.xlu1 %v475_v12, %s1888_s14  ;;  %722 = vst [vmem:[#allocation2 + $0x4] sm:$0x1] %v721_v55 }
  0x3b   : > { %734 = vst [vmem:[#allocation2 + $0x18] sm:$0x1] %v733_v58 }
  0x3c   : > { %737 = vst [vmem:[#allocation2 + $0x20] sm:$0x1] %v736_v62 }
  0x3d   : > { %740 = vst [vmem:[#allocation2 + $0x28] sm:$0x1] %v739_v8 }
  0x3e   : > { %480 = vrot.lane.b32.xlu2 %v474_v14, %s1888_s14  ;;  %v723_v24 = vld [vmem:[#allocation2] sm:$0x1] }
  0x3f   : > { %v724_v51 = vsel %vm2142_vm6, 0, %v723_v24  ;;  %v834_v19 = vld [vmem:[#allocation2 + $0x8] sm:$0xf] }
  0x40   : > { %725 = vst [vmem:[#allocation2] sm:$0x1] %v724_v51 }
  0x42   : > { %v846_v5 = vld [vmem:[#allocation2 + $0x18] sm:$0xf] }
  0x47   : > { %v882_v9 = vld [vmem:[#allocation2] sm:$0xf] }
  0x48   : > { %v901_v12 = vshrl.u32 %v882_v9, 16  ;;  %v904_v13 = vshll.u32 %v882_v9, 16 }
  0x90   : > { %v462_v36 = vpop.permute.xlu2 %461 }
  0x91   : > { %v495_v37 = vsel %vm484_vm3, %v443_v16, %v462_v36 }
  0x98   : > { %v481_v40 = vpop.permute.xlu2 %480 }
  0x99   : > { %v458_v21 = vpop.permute.xlu0 %457  ;;  %v511_v41 = vsel %vm484_vm3, %v469_v39, %v481_v40  ;;  %v840_v39 = vld [vmem:[#allocation2 + $0x10] sm:$0xf]  ;;  %v843_v40 = vld [vmem:[#allocation2 + $0x14] sm:$0x1] }
  0x9a   : > { %v487_v22 = vsel %vm484_vm3, %v441_v20, %v458_v21  ;;  %v837_v20 = vld [vmem:[#allocation2 + $0xc] sm:$0x1] }
  0x9b   : > { %657 = vmatmul.bf16.vlgmr.msra.gmra.mxu0 %v487_v22 }
  0x9c   : > { %v460_v31 = vpop.permute.xlu1 %459 }
  0x9d   : > { %v491_v0 = vsel %vm484_vm3, %v442_v32, %v460_v31  ;;  %v741_v31 = vld [vmem:[#allocation2 + $0x30] sm:$0x1] }
  0xa1   : > { %v477_v29 = vpop.permute.xlu0 %476 }
  0xa2   : > { %v503_v30 = vsel %vm484_vm3, %v467_v25, %v477_v29  ;;  %v903_v29 = vrot.slane %v901_v12, 4 }
  0xa3   : > { %686 = vmatmul.bf16.vlgmr.msra.gmra.mxu1 %v503_v30  ;;  %v906_v30 = vrot.slane %v904_v13, 5 }
  0xa4   : > { %v479_v34 = vpop.permute.xlu1 %478 }
  0xa5   : > { %v507_v35 = vsel %vm484_vm3, %v468_v33, %v479_v34  ;;  %v883_v33 = vld [vmem:[#allocation2 + $0x4] sm:$0x1]  ;;  %v742_v34 = vsel %vm2142_vm6, 0, %v741_v31  ;;  %v907_v10 = vor.u32 %v906_v30, %v903_v29 }
  0xa6   : > { %v910_v36 = vshll.u32 %v883_v33, 16  ;;  %743 = vst [vmem:[#allocation2 + $0x30] sm:$0x1] %v742_v34 }
  0xa7   : > { %v908_v7 = vrot.slane %v907_v10, 4 }
  0xa9   : > { %v464_v43 = vpop.permute.xlu0 %463 }
  0xaa   : > { %v499_v44 = vsel %vm484_vm3, %v444_v42, %v464_v43 }
  0xab   : > { %662 = vmatmul.bf16.gmra.mxu0 %v491_v0 }
  0xac   : > { %v483_v46 = vpop.permute.xlu1 %482 }
  0xad   : > { %v515_v48 = vsel %vm484_vm3, %v470_v45, %v483_v46  ;;  %v912_v45 = vrot.slane %v910_v36, 5  ;;  %v744_v46 = vld [vmem:[#allocation2 + $0x38] sm:$0x1] }
  0xae   : > { %v745_v51 = vsel %vm2142_vm6, 0, %v744_v46 }
  0xaf   : > { %746 = vst [vmem:[#allocation2 + $0x38] sm:$0x1] %v745_v51 }
  0xb3   : > { %691 = vmatmul.bf16.gmra.mxu1 %v507_v35 }
  0xbb   : > { %667 = vmatmul.bf16.gmra.mxu0 %v495_v37 }
  0xc3   : > { %696 = vmatmul.bf16.gmra.mxu1 %v511_v41 }
  0xcb   : > { %672 = vmatmul.bf16.gmra.mxu0 %v499_v44 }
  0xd3   : > { %701 = vmatmul.bf16.gmra.mxu1 %v515_v48  ;;  %v1034_v48 = vunpack.c.l.b16 %v882_v9 }
 0x118   : > { %v658_v59 = vpop.f32.mrf.mxu0 }
 0x119   : > { %v659_v63 = vadd.f32 %v2160_v61, %v658_v59 }
 0x120   : > { %v660_v1 = vpop.f32.mrf.mxu0  ;;  %v687_v3 = vpop.f32.mrf.mxu1 }
 0x121   : > { %v688_v4 = vadd.f32 %v687_v3, %v659_v63  ;;  %v661_v14 = vadd.f32 %v2160_v61, %v660_v1 }
 0x123   : > { %v707_v6 = vpack.c.bf16 %v688_v4, %v688_v4  ;;  %v913_v4 = vsel %vm2016_vm2, %v908_v7, %v912_v45 }
 0x125   : > { %v751_v11 = vshrl.u32 %v707_v6, 16  ;;  %v754_v17 = vshll.u32 %v707_v6, 16  ;;  %v849_v6 = vld [vmem:[#allocation2 + $0x1c] sm:$0x1] }
 0x127   : > { %v753_v15 = vrot.slane %v751_v11, 7 }
 0x128   : > { %v663_v21 = vpop.f32.mrf.mxu0  ;;  %v689_v22 = vpop.f32.mrf.mxu1 }
 0x129   : > { %v756_v23 = vor.u32 %v754_v17, %v753_v15  ;;  %v757_v25 = vrot.slane %v753_v15, 4  ;;  %v690_v28 = vadd.f32 %v689_v22, %v661_v14  ;;  %v664_v16 = vadd.f32 %v2160_v61, %v663_v21 }
 0x12b   : > { %v835_v32 = vsel %vm2169_vm9, %v756_v23, %v834_v19  ;;  %v838_v0 = vsel %vm2142_vm6, %v757_v25, %v837_v20  ;;  %v708_v2 = vpack.c.bf16 %v690_v28, %v690_v28  ;;  %v1046_v19 = vunpack.c.l.b16 %v913_v4  ;;  %v747_v20 = vld [vmem:[#allocation2 + $0x40] sm:$0x1] }
 0x12c   : > { %836 = vst [vmem:[#allocation2 + $0x8] sm:$0xf] %v835_v32  ;;  %v748_v28 = vsel %vm2142_vm6, 0, %v747_v20 }
 0x12d   : > { %839 = vst [vmem:[#allocation2 + $0xc] sm:$0x1] %v838_v0  ;;  %v759_v35 = vshrl.u32 %v708_v2, 16  ;;  %v762_v38 = vshll.u32 %v708_v2, 16 }
 0x12e   : > { %749 = vst [vmem:[#allocation2 + $0x40] sm:$0x1] %v748_v28 }
 0x12f   : > { %v761_v37 = vrot.slane %v759_v35, 7 }
 0x130   : > { %v665_v41 = vpop.f32.mrf.mxu0  ;;  %v692_v26 = vpop.f32.mrf.mxu1 }
 0x131   : > { %v764_v42 = vor.u32 %v762_v38, %v761_v37  ;;  %v765_v43 = vrot.slane %v761_v37, 4  ;;  %v693_v44 = vadd.f32 %v692_v26, %v664_v16  ;;  %v666_v63 = vadd.f32 %v2160_v61, %v665_v41  ;;  %v855_v41 = vld [vmem:[#allocation2 + $0x24] sm:$0x1] }
 0x133   : > { %v841_v57 = vsel %vm2169_vm9, %v764_v42, %v840_v39  ;;  %v844_v49 = vsel %vm2142_vm6, %v765_v43, %v843_v40  ;;  %v709_v50 = vpack.c.bf16 %v693_v44, %v693_v44  ;;  %v884_v24 = vld [vmem:[#allocation2 + $0x8] sm:$0xf]  ;;  %v852_v40 = vld [vmem:[#allocation2 + $0x20] sm:$0xf] }
 0x134   : > { %842 = vst [vmem:[#allocation2 + $0x10] sm:$0xf] %v841_v57  ;;  %v885_v52 = vld [vmem:[#allocation2 + $0xc] sm:$0x1]  ;;  %v915_v53 = vshrl.u32 %v884_v24, 16  ;;  %v918_v54 = vshll.u32 %v884_v24, 16  ;;  %v1035_v55 = vunpack.c.l.b16 %v884_v24 }
 0x135   : > { %845 = vst [vmem:[#allocation2 + $0x14] sm:$0x1] %v844_v49  ;;  %v767_v56 = vshrl.u32 %v709_v50, 16  ;;  %v924_v60 = vshll.u32 %v885_v52, 16  ;;  %v770_v3 = vshll.u32 %v709_v50, 16 }
 0x136   : > { %v917_v58 = vrot.slane %v915_v53, 4  ;;  %v920_v59 = vrot.slane %v918_v54, 5  ;;  %v2186_v62 = vpack.c.b16 %v1035_v55, %v1034_v48 }
 0x137   : > { %v769_v1 = vrot.slane %v767_v56, 7  ;;  %v926_v17 = vrot.slane %v924_v60, 5 }
 0x138   : > { %v668_v8 = vpop.f32.mrf.mxu0  ;;  %v694_v9 = vpop.f32.mrf.mxu1  ;;  %v921_v11 = vor.u32 %v920_v59, %v917_v58 }
 0x139   : > { %v772_v12 = vor.u32 %v770_v3, %v769_v1  ;;  %v773_v13 = vrot.slane %v769_v1, 4  ;;  %v695_v14 = vadd.f32 %v694_v9, %v666_v63  ;;  %v669_v16 = vadd.f32 %v2160_v61, %v668_v8  ;;  %v858_v8 = vld [vmem:[#allocation2 + $0x28] sm:$0xf]  ;;  %v861_v9 = vld [vmem:[#allocation2 + $0x2c] sm:$0x1] }
 0x13a   : > { %v922_v15 = vrot.slane %v921_v11, 4 }
 0x13b   : > { %v847_v21 = vsel %vm2169_vm9, %v772_v12, %v846_v5  ;;  %v850_v22 = vsel %vm2142_vm6, %v773_v13, %v849_v6  ;;  %v710_v23 = vpack.c.bf16 %v695_v14, %v695_v14  ;;  %v886_v25 = vld [vmem:[#allocation2 + $0x10] sm:$0xf] }
 0x13c   : > { %848 = vst [vmem:[#allocation2 + $0x18] sm:$0xf] %v847_v21  ;;  %v927_v29 = vsel %vm2016_vm2, %v922_v15, %v926_v17  ;;  %v887_v30 = vld [vmem:[#allocation2 + $0x14] sm:$0x1]  ;;  %v929_v31 = vshrl.u32 %v886_v25, 16  ;;  %v932_v32 = vshll.u32 %v886_v25, 16  ;;  %v1036_v0 = vunpack.c.l.b16 %v886_v25 }
 0x13d   : > { %851 = vst [vmem:[#allocation2 + $0x1c] sm:$0x1] %v850_v22  ;;  %v775_v2 = vshrl.u32 %v710_v23, 16  ;;  %v1047_v33 = vunpack.c.l.b16 %v927_v29  ;;  %v938_v10 = vshll.u32 %v887_v30, 16  ;;  %v778_v38 = vshll.u32 %v710_v23, 16 }
 0x13e   : > { %v931_v34 = vrot.slane %v929_v31, 4  ;;  %v934_v35 = vrot.slane %v932_v32, 5  ;;  %v2199_v36 = vpack.c.b16 %v1036_v0, %v1035_v55 }
 0x13f   : > { %v777_v37 = vrot.slane %v775_v2, 7  ;;  %v1054_v39 = vpack.c.b16 %v1047_v33, %v1046_v19  ;;  %v940_v48 = vrot.slane %v938_v10, 5 }
 0x140   : > { %v670_v26 = vpop.f32.mrf.mxu0  ;;  %v697_v42 = vpop.f32.mrf.mxu1  ;;  %v935_v43 = vor.u32 %v934_v35, %v931_v34 }
 0x141   : > { %v780_v44 = vor.u32 %v778_v38, %v777_v37  ;;  %v781_v7 = vrot.slane %v777_v37, 4  ;;  %v698_v45 = vadd.f32 %v697_v42, %v669_v16  ;;  %1058 = vrot.lane.b32.xlu2 %v1054_v39, %s1888_s14  ;;  %v671_v3 = vadd.f32 %v2160_v61, %v670_v26 }
 0x142   : > { %v936_v46 = vrot.slane %v935_v43, 4 }
 0x143   : > { %v853_v57 = vsel %vm2169_vm9, %v780_v44, %v852_v40  ;;  %v856_v49 = vsel %vm2142_vm6, %v781_v7, %v855_v41  ;;  %v711_v50 = vpack.c.bf16 %v698_v45, %v698_v45  ;;  %v888_v24 = vld [vmem:[#allocation2 + $0x18] sm:$0xf]  ;;  %v864_v40 = vld [vmem:[#allocation2 + $0x30] sm:$0xf]  ;;  %v867_v41 = vld [vmem:[#allocation2 + $0x34] sm:$0x1] }
 0x144   : > { %854 = vst [vmem:[#allocation2 + $0x20] sm:$0xf] %v853_v57  ;;  %v941_v51 = vsel %vm2016_vm2, %v936_v46, %v940_v48  ;;  %v889_v52 = vld [vmem:[#allocation2 + $0x1c] sm:$0x1]  ;;  %v943_v53 = vshrl.u32 %v888_v24, 16  ;;  %v946_v54 = vshll.u32 %v888_v24, 16  ;;  %v1037_v55 = vunpack.c.l.b16 %v888_v24 }
 0x145   : > { %857 = vst [vmem:[#allocation2 + $0x24] sm:$0x1] %v856_v49  ;;  %v783_v56 = vshrl.u32 %v711_v50, 16  ;;  %v1048_v58 = vunpack.c.l.b16 %v941_v51  ;;  %v952_v63 = vshll.u32 %v889_v52, 16  ;;  %v786_v5 = vshll.u32 %v711_v50, 16 }
 0x146   : > { %v945_v59 = vrot.slane %v943_v53, 4  ;;  %v948_v60 = vrot.slane %v946_v54, 5  ;;  %v2209_v1 = vpack.c.b16 %v1037_v55, %v1036_v0 }
 0x147   : > { %v785_v4 = vrot.slane %v783_v56, 7  ;;  %v1073_v6 = vpack.c.b16 %v1048_v58, %v1047_v33  ;;  %v954_v20 = vrot.slane %v952_v63, 5 }
 0x148   : > { %v699_v11 = vpop.f32.mrf.mxu1  ;;  %v949_v12 = vor.u32 %v948_v60, %v945_v59  ;;  %v673_v17 = vpop.f32.mrf.mxu0 }
 0x149   : > { %v788_v13 = vor.u32 %v786_v5, %v785_v4  ;;  %v789_v14 = vrot.slane %v785_v4, 4  ;;  %v700_v15 = vadd.f32 %v699_v11, %v671_v3  ;;  %1077 = vrot.lane.b32.xlu0 %v1073_v6, %s1888_s14  ;;  %v674_v0 = vadd.f32 %v2160_v61, %v673_v17  ;;  %v873_v11 = vld [vmem:[#allocation2 + $0x3c] sm:$0x1] }
 0x14a   : > { %v950_v19 = vrot.slane %v949_v12, 4 }
 0x14b   : > { %v859_v21 = vsel %vm2169_vm9, %v788_v13, %v858_v8  ;;  %v862_v22 = vsel %vm2142_vm6, %v789_v14, %v861_v9  ;;  %v712_v23 = vpack.c.bf16 %v700_v15, %v700_v15  ;;  %v890_v25 = vld [vmem:[#allocation2 + $0x20] sm:$0xf]  ;;  %v870_v9 = vld [vmem:[#allocation2 + $0x38] sm:$0xf] }
 0x14c   : > { %860 = vst [vmem:[#allocation2 + $0x28] sm:$0xf] %v859_v21  ;;  %v955_v28 = vsel %vm2016_vm2, %v950_v19, %v954_v20  ;;  %v891_v29 = vld [vmem:[#allocation2 + $0x24] sm:$0x1]  ;;  %v957_v30 = vshrl.u32 %v890_v25, 16  ;;  %v960_v31 = vshll.u32 %v890_v25, 16  ;;  %v1038_v32 = vunpack.c.l.b16 %v890_v25 }
 0x14d   : > { %863 = vst [vmem:[#allocation2 + $0x2c] sm:$0x1] %v862_v22  ;;  %v791_v2 = vshrl.u32 %v712_v23, 16  ;;  %v1049_v33 = vunpack.c.l.b16 %v955_v28  ;;  %v966_v10 = vshll.u32 %v891_v29, 16  ;;  %v794_v38 = vshll.u32 %v712_v23, 16  ;;  %v1750_v19 = vld [vmem:[%s2439_s3 + $0x38] sm:$0xff] }
 0x14e   : > { %v959_v34 = vrot.slane %v957_v30, 4  ;;  %v962_v35 = vrot.slane %v960_v31, 5  ;;  %v2220_v16 = vpack.c.b16 %v1038_v32, %v1037_v55  ;;  %1249 = vmatpush.bf16.msra.mxu2 %v1750_v19  ;;  %v1749_v28 = vld [vmem:[%s2439_s3 + $0x30] sm:$0xff] }
 0x14f   : > { %v793_v37 = vrot.slane %v791_v2, 7  ;;  %v1055_v39 = vpack.c.b16 %v1049_v33, %v1048_v58  ;;  %v968_v46 = vrot.slane %v966_v10, 5 }
 0x150   : > { %v702_v26 = vpop.f32.mrf.mxu1  ;;  %v963_v42 = vor.u32 %v962_v35, %v959_v34  ;;  %v675_v24 = vpop.f32.mrf.mxu0 }
 0x151   : > { %v796_v43 = vor.u32 %v794_v38, %v793_v37  ;;  %v797_v44 = vrot.slane %v793_v37, 4  ;;  %v703_v7 = vadd.f32 %v702_v26, %v674_v0  ;;  %1060 = vrot.lane.b32.xlu1 %v1055_v39, %s1888_s14  ;;  %v676_v4 = vadd.f32 %v2160_v61, %v675_v24  ;;  %v876_v26 = vld [vmem:[#allocation2 + $0x40] sm:$0xf] }
 0x152   : > { %v964_v45 = vrot.slane %v963_v42, 4  ;;  %1250 = vmatpush.bf16.msra.mxu2 %v1749_v28  ;;  %v879_v42 = vld [vmem:[#allocation2 + $0x44] sm:$0x1] }
 0x153   : > { %v865_v48 = vsel %vm2169_vm9, %v796_v43, %v864_v40  ;;  %v868_v57 = vsel %vm2142_vm6, %v797_v44, %v867_v41  ;;  %v713_v49 = vpack.c.bf16 %v703_v7, %v703_v7  ;;  %v892_v50 = vld [vmem:[#allocation2 + $0x28] sm:$0xf] }
 0x154   : > { %866 = vst [vmem:[#allocation2 + $0x30] sm:$0xf] %v865_v48  ;;  %v969_v51 = vsel %vm2016_vm2, %v964_v45, %v968_v46  ;;  %v893_v52 = vld [vmem:[#allocation2 + $0x2c] sm:$0x1]  ;;  %v971_v53 = vshrl.u32 %v892_v50, 16  ;;  %v974_v54 = vshll.u32 %v892_v50, 16  ;;  %v1039_v55 = vunpack.c.l.b16 %v892_v50 }
 0x155   : > { %869 = vst [vmem:[#allocation2 + $0x34] sm:$0x1] %v868_v57  ;;  %v799_v56 = vshrl.u32 %v713_v49, 16  ;;  %v1050_v58 = vunpack.c.l.b16 %v969_v51  ;;  %v980_v63 = vshll.u32 %v893_v52, 16  ;;  %v802_v6 = vshll.u32 %v713_v49, 16  ;;  %v1748_v41 = vld [vmem:[%s2439_s3 + $0x28] sm:$0xff] }
 0x156   : > { %v973_v59 = vrot.slane %v971_v53, 4  ;;  %v976_v60 = vrot.slane %v974_v54, 5  ;;  %v2229_v3 = vpack.c.b16 %v1039_v55, %v1038_v32  ;;  %1251 = vmatpush.bf16.msra.mxu2 %v1748_v41  ;;  %v1747_v50 = vld [vmem:[%s2439_s3 + $0x20] sm:$0xff] }
 0x157   : > { %v801_v5 = vrot.slane %v799_v56, 7  ;;  %v1074_v8 = vpack.c.b16 %v1050_v58, %v1049_v33  ;;  %v982_v21 = vrot.slane %v980_v63, 5 }
 0x158   : > { %v704_v12 = vpop.f32.mrf.mxu1  ;;  %v977_v13 = vor.u32 %v976_v60, %v973_v59  ;;  %v1746_v60 = vld [vmem:[%s2439_s3 + $0x18] sm:$0xff] }
 0x159   : > { %v804_v14 = vor.u32 %v802_v6, %v801_v5  ;;  %v805_v15 = vrot.slane %v801_v5, 4  ;;  %v705_v17 = vadd.f32 %v704_v12, %v676_v4  ;;  %1079 = vrot.lane.b32.xlu2 %v1074_v8, %s1888_s14  ;;  %v1745_v8 = vld [vmem:[%s2439_s3 + $0x10] sm:$0xff] }
 0x15a   : > { %v978_v20 = vrot.slane %v977_v13, 4  ;;  %1252 = vmatpush.bf16.msra.mxu2 %v1747_v50 }
 0x15b   : > { %v871_v61 = vsel %vm2169_vm9, %v804_v14, %v870_v9  ;;  %v874_v22 = vsel %vm2142_vm6, %v805_v15, %v873_v11  ;;  %v714_v23 = vpack.c.bf16 %v705_v17, %v705_v17  ;;  %v894_v25 = vld [vmem:[#allocation2 + $0x30] sm:$0xf] }
 0x15c   : > { %872 = vst [vmem:[#allocation2 + $0x38] sm:$0xf] %v871_v61  ;;  %v983_v29 = vsel %vm2016_vm2, %v978_v20, %v982_v21  ;;  %v895_v30 = vld [vmem:[#allocation2 + $0x34] sm:$0x1]  ;;  %v985_v31 = vshrl.u32 %v894_v25, 16  ;;  %v988_v32 = vshll.u32 %v894_v25, 16  ;;  %v1040_v0 = vunpack.c.l.b16 %v894_v25 }
 0x15d   : > { %875 = vst [vmem:[#allocation2 + $0x3c] sm:$0x1] %v874_v22  ;;  %v807_v2 = vshrl.u32 %v714_v23, 16  ;;  %v1051_v33 = vunpack.c.l.b16 %v983_v29  ;;  %v994_v10 = vshll.u32 %v895_v30, 16  ;;  %v810_v39 = vshll.u32 %v714_v23, 16  ;;  %v1744_v22 = vld [vmem:[%s2439_s3 + $0x8] sm:$0xff] }
 0x15e   : > { %v987_v34 = vrot.slane %v985_v31, 4  ;;  %v990_v35 = vrot.slane %v988_v32, 5  ;;  %v2245_v37 = vpack.c.b16 %v1040_v0, %v1039_v55  ;;  %1253 = vmatpush.bf16.msra.mxu2 %v1746_v60  ;;  %v1743_v29 = vld [vmem:[%s2439_s3] sm:$0xff] }
 0x15f   : > { %v809_v38 = vrot.slane %v807_v2, 7  ;;  %v1056_v40 = vpack.c.b16 %v1051_v33, %v1050_v58  ;;  %v996_v46 = vrot.slane %v994_v10, 5  ;;  %v1757_v2 = vld [vmem:[%s2439_s3 + $0x70] sm:$0xff]  ;;  %v1752_v10 = vld [vmem:[%s2439_s3 + $0x48] sm:$0xff] }
 0x160   : > { %v991_v43 = vor.u32 %v990_v35, %v987_v34  ;;  %v1754_v34 = vld [vmem:[%s2439_s3 + $0x58] sm:$0xff]  ;;  %v1753_v35 = vld [vmem:[%s2439_s3 + $0x50] sm:$0xff] }
 0x161   : > { %v812_v44 = vor.u32 %v810_v39, %v809_v38  ;;  %v813_v7 = vrot.slane %v809_v38, 4  ;;  %1062 = vrot.lane.b32.xlu0 %v1056_v40, %s1888_s14  ;;  %v1751_v38 = vld [vmem:[%s2439_s3 + $0x40] sm:$0xff] }
 0x162   : > { %v992_v45 = vrot.slane %v991_v43, 4  ;;  %1254 = vmatpush.bf16.msra.mxu2 %v1745_v8 }
 0x163   : > { %v877_v48 = vsel %vm2169_vm9, %v812_v44, %v876_v26  ;;  %v880_v57 = vsel %vm2142_vm6, %v813_v7, %v879_v42  ;;  %v896_v49 = vld [vmem:[#allocation2 + $0x38] sm:$0xf] }
 0x164   : > { %878 = vst [vmem:[#allocation2 + $0x40] sm:$0xf] %v877_v48  ;;  %v997_v24 = vsel %vm2016_vm2, %v992_v45, %v996_v46  ;;  %v897_v51 = vld [vmem:[#allocation2 + $0x3c] sm:$0x1]  ;;  %v999_v52 = vshrl.u32 %v896_v49, 16  ;;  %v1002_v53 = vshll.u32 %v896_v49, 16  ;;  %v1041_v54 = vunpack.c.l.b16 %v896_v49 }
 0x165   : > { %881 = vst [vmem:[#allocation2 + $0x44] sm:$0x1] %v880_v57  ;;  %v1052_v18 = vunpack.c.l.b16 %v997_v24  ;;  %v1008_v47 = vshll.u32 %v897_v51, 16 }
 0x166   : > { %v1001_v55 = vrot.slane %v999_v52, 4  ;;  %v1004_v56 = vrot.slane %v1002_v53, 5  ;;  %v2260_v58 = vpack.c.b16 %v1041_v54, %v1040_v0  ;;  %1255 = vmatpush.bf16.msra.mxu2 %v1744_v22  ;;  %v1758_v0 = vld [vmem:[%s2439_s3 + $0x78] sm:$0xff] }
 0x167   : > { %v1075_v59 = vpack.c.b16 %v1052_v18, %v1051_v33  ;;  %v1010_v5 = vrot.slane %v1008_v47, 5  ;;  %1278 = vmatpush.bf16.msra.mxu3 %v1758_v0  ;;  %v1755_v33 = vld [vmem:[%s2439_s3 + $0x60] sm:$0xff] }
 0x168   : > { %v1005_v63 = vor.u32 %v1004_v56, %v1001_v55 }
 0x169   : > { %1081 = vrot.lane.b32.xlu1 %v1075_v59, %s1888_s14 }
 0x16a   : > { %v1006_v4 = vrot.slane %v1005_v63, 4  ;;  %1256 = vmatpush.bf16.msra.mxu2 %v1743_v29 }
 0x16b   : > { %v898_v6 = vld [vmem:[#allocation2 + $0x40] sm:$0xf]  ;;  %1279 = vmatpush.bf16.msra.mxu3 %v1757_v2 }
 0x16c   : > { %v1011_v9 = vsel %vm2016_vm2, %v1006_v4, %v1010_v5  ;;  %v899_v11 = vld [vmem:[#allocation2 + $0x44] sm:$0x1]  ;;  %v1013_v12 = vshrl.u32 %v898_v6, 16  ;;  %v1016_v13 = vshll.u32 %v898_v6, 16  ;;  %v1067_v14 = vunpack.c.l.b16 %v898_v6 }
 0x16d   : > { %v1053_v15 = vunpack.c.l.b16 %v1011_v9  ;;  %v1022_v20 = vshll.u32 %v899_v11, 16 }
 0x16e   : > { %v1015_v17 = vrot.slane %v1013_v12, 4  ;;  %v1018_v19 = vrot.slane %v1016_v13, 5  ;;  %v1071_v21 = vpack.c.b16 %v1067_v14, %v1041_v54 }
 0x16f   : > { %v1057_v61 = vpack.c.b16 %v1053_v15, %v1052_v18  ;;  %v1024_v28 = vrot.slane %v1022_v20, 5  ;;  %1280 = vmatpush.bf16.msra.mxu3 %v1756_v27 }
 0x170   : > { %v1019_v23 = vor.u32 %v1018_v19, %v1015_v17 }
 0x171   : > { %1064 = vrot.lane.b32.xlu2 %v1057_v61, %s1888_s14 }
 0x172   : > { %v1020_v25 = vrot.slane %v1019_v23, 4  ;;  %v1339_v23 = vlaneseq }
 0x173   : > { %1281 = vmatpush.bf16.msra.mxu3 %v1755_v33 }
 0x174   : > { %v1025_v30 = vsel %vm2016_vm2, %v1020_v25, %v1024_v28  ;;  %v1340_v25 = vand.u32 127, %v1339_v23 }
 0x175   : > { %v1072_v31 = vunpack.c.l.b16 %v1025_v30 }
 0x176   : > { %vm1341_vm10 = vcmp.lt.s32.totalorder %v1340_v25, 32 }
 0x177   : > { %v1076_v32 = vpack.c.b16 %v1072_v31, %v1053_v15  ;;  %1282 = vmatpush.bf16.msra.mxu3 %v1754_v34 }
 0x179   : > { %1083 = vrot.lane.b32.xlu0 %v1076_v32, %s1888_s14  ;;  %s1844_s14 = scalar_lea.hbm %s2443_s7, 128 }
 0x17a   : > { %p1846_p1 = scmp.lt.s32.totalorder %s1844_s14, %s1840_s21 }
 0x17b   : > { %1283 = vmatpush.bf16.msra.mxu3 %v1753_v35 }
 0x17c   : > { %p1847_p2 = por %p1846_p1, %p1845_p0 }
 0x17e   : > { %p1848_p3 = pnand %p1847_p2, %p1843_p13 }
 0x17f   : > { %1284 = vmatpush.bf16.msra.mxu3 %v1752_v10 }
 0x183   : > { %1285 = vmatpush.bf16.msra.mxu3 %v1751_v38 }
 0x19b   : > { %v1059_v39 = vpop.permute.xlu2 %1058 }
 0x19c   : > { %v1087_v40 = vsel %vm484_vm3, %v2186_v62, %v1059_v39 }
 0x19d   : > { %1257 = vmatmul.bf16.vlgmr.msra.gmra.mxu2 %v1087_v40 }
 0x1b3   : > { %v1080_v44 = vpop.permute.xlu2 %1079 }
 0x1b4   : > { %v1107_v7 = vsel %vm484_vm3, %v2220_v16, %v1080_v44 }
 0x1bb   : > { %v1078_v41 = vpop.permute.xlu0 %1077 }
 0x1bc   : > { %v1103_v26 = vsel %vm484_vm3, %v2199_v36, %v1078_v41 }
 0x1bd   : > { %1286 = vmatmul.bf16.vlgmr.msra.gmra.mxu3 %v1103_v26 }
 0x1c3   : > { %v1061_v42 = vpop.permute.xlu1 %1060 }
 0x1c4   : > { %v1091_v43 = vsel %vm484_vm3, %v2209_v1, %v1061_v42 }
 0x1c5   : > { %1262 = vmatmul.bf16.gmra.mxu2 %v1091_v43 }
 0x1cb   : > { %v1065_v48 = vpop.permute.xlu2 %1064 }
 0x1cc   : > { %v1099_v1 = vsel %vm484_vm3, %v2260_v58, %v1065_v48 }
 0x1cd   : > { %1291 = vmatmul.bf16.gmra.mxu3 %v1107_v7 }
 0x1d3   : > { %v1063_v45 = vpop.permute.xlu0 %1062 }
 0x1d4   : > { %v1095_v62 = vsel %vm484_vm3, %v2229_v3, %v1063_v45  ;;  %v1805_v3 = vld [vmem:[%s2440_s4] ss:$0 sm:$0xff] }
 0x1d5   : > { %1267 = vmatmul.bf16.gmra.mxu2 %v1095_v62 }
 0x1db   : > { %v1082_v46 = vpop.permute.xlu1 %1081 }
 0x1dc   : > { %v1111_v36 = vsel %vm484_vm3, %v2245_v37, %v1082_v46 }
 0x1dd   : > { %1296 = vmatmul.bf16.gmra.mxu3 %v1111_v36 }
 0x1e5   : > { %1272 = vmatmul.bf16.gmra.mxu2 %v1099_v1 }
 0x1eb   : > { %v1084_v57 = vpop.permute.xlu0 %1083 }
 0x1ec   : > { %v1115_v49 = vsel %vm484_vm3, %v1071_v21, %v1084_v57 }
 0x1ed   : > { %1301 = vmatmul.bf16.gmra.mxu3 %v1115_v49 }
 0x220   : > { %v1258_v16 = vpop.f32.mrf.mxu2 }
 0x221   : > { %v1259_v50 = vadd.f32 %v1805_v3, %v1258_v16 }
 0x228   : > { %v1260_v24 = vpop.f32.mrf.mxu2 }
 0x229   : > { %v1261_v37 = vadd.f32 %v1805_v3, %v1260_v24 }
 0x240   : > { %v1287_v51 = vpop.f32.mrf.mxu3 }
 0x241   : > { %v1288_v52 = vadd.f32 %v1287_v51, %v1259_v50 }
 0x243   : > { %1307 = vadd.xlane.f32.xlu1 %v1288_v52 }
 0x248   : > { %v1263_v53 = vpop.f32.mrf.mxu2  ;;  %v1289_v54 = vpop.f32.mrf.mxu3 }
 0x249   : > { %v1290_v18 = vadd.f32 %v1289_v54, %v1261_v37  ;;  %v1264_v55 = vadd.f32 %v1805_v3, %v1263_v53 }
 0x24b   : > { %1309 = vadd.xlane.f32.xlu2 %v1290_v18 }
 0x250   : > { %v1265_v56 = vpop.f32.mrf.mxu2  ;;  %v1292_v47 = vpop.f32.mrf.mxu3 }
 0x251   : > { %v1293_v58 = vadd.f32 %v1292_v47, %v1264_v55  ;;  %v1266_v59 = vadd.f32 %v1805_v3, %v1265_v56 }
 0x253   : > { %1311 = vadd.xlane.f32.xlu0 %v1293_v58 }
 0x258   : > { %v1268_v60 = vpop.f32.mrf.mxu2  ;;  %v1294_v63 = vpop.f32.mrf.mxu3 }
 0x259   : > { %v1295_v4 = vadd.f32 %v1294_v63, %v1266_v59  ;;  %v1269_v5 = vadd.f32 %v1805_v3, %v1268_v60 }
 0x25b   : > { %1313 = vadd.xlane.f32.xlu2 %v1295_v4 }
 0x260   : > { %v1270_v6 = vpop.f32.mrf.mxu2  ;;  %v1297_v8 = vpop.f32.mrf.mxu3 }
 0x261   : > { %v1298_v9 = vadd.f32 %v1297_v8, %v1269_v5  ;;  %v1271_v11 = vadd.f32 %v1805_v3, %v1270_v6 }
 0x263   : > { %1315 = vadd.xlane.f32.xlu1 %v1298_v9 }
 0x268   : > { %v1299_v12 = vpop.f32.mrf.mxu3  ;;  %v1273_v14 = vpop.f32.mrf.mxu2 }
 0x269   : > { %v1300_v13 = vadd.f32 %v1299_v12, %v1271_v11  ;;  %v1274_v15 = vadd.f32 %v1805_v3, %v1273_v14 }
 0x26b   : > { %1317 = vadd.xlane.f32.xlu2 %v1300_v13 }
 0x270   : > { %v1302_v17 = vpop.f32.mrf.mxu3  ;;  %v1275_v20 = vpop.f32.mrf.mxu2 }
 0x271   : > { %v1303_v19 = vadd.f32 %v1302_v17, %v1274_v15  ;;  %v1276_v21 = vadd.f32 %v1805_v3, %v1275_v20 }
 0x273   : > { %1319 = vadd.xlane.f32.xlu0 %v1303_v19 }
 0x278   : > { %v1304_v61 = vpop.f32.mrf.mxu3 }
 0x279   : > { %v1305_v22 = vadd.f32 %v1304_v61, %v1276_v21  ;;  %v2364_v61 = vld [vmem:[%s2442_s6] ss:$0 sm:$0xff] }
 0x27b   : > { %1321 = vadd.xlane.f32.xlu1 %v1305_v22 }
 0x2b6   : > { %v1308_v28 = vpop.xlane.xlu1 %1307 }
 0x2b7   : > { %v1323_v29 = vmul.f32 0.03125, %v1308_v28 }
 0x2b9   : > { %v2323_v30 = vsub.f32 %v1288_v52, %v1323_v29 }
 0x2bb   : > { %v1342_v31 = vsel %vm1341_vm10, %v2323_v30, 0.0 }
 0x2bc   : > { %v1350_v32 = vmul.f32 %v1342_v31, %v1342_v31 }
 0x2be   : > { %v1310_v0 = vpop.xlane.xlu2 %1309  ;;  %1358 = vadd.xlane.f32.xlu2 %v1350_v32 }
 0x2bf   : > { %v1324_v2 = vmul.f32 0.03125, %v1310_v0 }
 0x2c1   : > { %v2327_v27 = vsub.f32 %v1290_v18, %v1324_v2 }
 0x2c3   : > { %v1343_v33 = vsel %vm1341_vm10, %v2327_v27, 0.0 }
 0x2c4   : > { %v1351_v34 = vmul.f32 %v1343_v33, %v1343_v33 }
 0x2c6   : > { %1360 = vadd.xlane.f32.xlu0 %v1351_v34  ;;  %v1312_v35 = vpop.xlane.xlu0 %1311 }
 0x2c7   : > { %v1325_v10 = vmul.f32 0.03125, %v1312_v35 }
 0x2c9   : > { %v2331_v38 = vsub.f32 %v1293_v58, %v1325_v10 }
 0x2cb   : > { %v1344_v39 = vsel %vm1341_vm10, %v2331_v38, 0.0 }
 0x2cc   : > { %v1352_v40 = vmul.f32 %v1344_v39, %v1344_v39 }
 0x2ce   : > { %v1314_v41 = vpop.xlane.xlu2 %1313  ;;  %1362 = vadd.xlane.f32.xlu1 %v1352_v40 }
 0x2cf   : > { %v1326_v26 = vmul.f32 0.03125, %v1314_v41 }
 0x2d1   : > { %v2335_v42 = vsub.f32 %v1295_v4, %v1326_v26 }
 0x2d3   : > { %v1345_v43 = vsel %vm1341_vm10, %v2335_v42, 0.0 }
 0x2d4   : > { %v1353_v44 = vmul.f32 %v1345_v43, %v1345_v43 }
 0x2d6   : > { %1364 = vadd.xlane.f32.xlu2 %v1353_v44  ;;  %v1316_v7 = vpop.xlane.xlu1 %1315 }
 0x2d7   : > { %v1327_v45 = vmul.f32 0.03125, %v1316_v7 }
 0x2d9   : > { %v2339_v62 = vsub.f32 %v1298_v9, %v1327_v45 }
 0x2db   : > { %v1346_v46 = vsel %vm1341_vm10, %v2339_v62, 0.0 }
 0x2dc   : > { %v1354_v36 = vmul.f32 %v1346_v46, %v1346_v46 }
 0x2de   : > { %v1318_v48 = vpop.xlane.xlu2 %1317  ;;  %1366 = vadd.xlane.f32.xlu0 %v1354_v36 }
 0x2df   : > { %v1328_v1 = vmul.f32 0.03125, %v1318_v48 }
 0x2e1   : > { %v2343_v57 = vsub.f32 %v1300_v13, %v1328_v1 }
 0x2e3   : > { %v1347_v49 = vsel %vm1341_vm10, %v2343_v57, 0.0 }
 0x2e4   : > { %v1355_v16 = vmul.f32 %v1347_v49, %v1347_v49 }
 0x2e6   : > { %1368 = vadd.xlane.f32.xlu1 %v1355_v16  ;;  %v1320_v3 = vpop.xlane.xlu0 %1319 }
 0x2e7   : > { %v1329_v50 = vmul.f32 0.03125, %v1320_v3 }
 0x2e9   : > { %v2347_v24 = vsub.f32 %v1303_v19, %v1329_v50  ;;  %v2359_v19 = vld [vmem:[%s2441_s5] ss:$0 sm:$0xff] }
 0x2eb   : > { %v1348_v51 = vsel %vm1341_vm10, %v2347_v24, 0.0 }
 0x2ec   : > { %v1356_v52 = vmul.f32 %v1348_v51, %v1348_v51 }
 0x2ee   : > { %v1322_v37 = vpop.xlane.xlu1 %1321  ;;  %1370 = vadd.xlane.f32.xlu2 %v1356_v52 }
 0x2ef   : > { %v1330_v53 = vmul.f32 0.03125, %v1322_v37 }
 0x2f1   : > { %v2351_v54 = vsub.f32 %v1305_v22, %v1330_v53 }
 0x2f3   : > { %v1349_v18 = vsel %vm1341_vm10, %v2351_v54, 0.0 }
 0x2f4   : > { %v1357_v55 = vmul.f32 %v1349_v18, %v1349_v18 }
 0x2f6   : > { %1372 = vadd.xlane.f32.xlu0 %v1357_v55 }
 0x331   : > { %v1359_v56 = vpop.xlane.xlu2 %1358 }
 0x332   : > { %v1374_v47 = vmul.f32 0.03125, %v1359_v56 }
 0x334   : > { %v1382_v58 = vadd.f32 1e-05, %v1374_v47 }
 0x336   : > { %1808 = vrsqrt.f32 %v1382_v58  ;;  %vm1396_vm12 = vweird.f32 %v1382_v58 }
 0x339   : > { %v1361_v59 = vpop.xlane.xlu0 %1360 }
 0x33a   : > { %v1375_v60 = vmul.f32 0.03125, %v1361_v59 }
 0x33c   : > { %v1809_v63 = vpop.eup %1808  ;;  %v1383_v4 = vadd.f32 1e-05, %v1375_v60 }
 0x33d   : > { %v1391_v5 = vmul.f32 %v1809_v63, %v1382_v58  ;;  %vm1397_vm11 = vweird.f32 %v1809_v63 }
 0x33e   : > { %1810 = vrsqrt.f32 %v1383_v4  ;;  %vm1398_vm13 = vmor %vm1396_vm12, %vm1397_vm11  ;;  %vm1406_vm15 = vweird.f32 %v1383_v4 }
 0x33f   : > { %v1392_v6 = vmul.f32 %v1809_v63, %v1391_v5 }
 0x341   : > { %v1393_v8 = vmul.f32 0.5, %v1392_v6  ;;  %v1363_v9 = vpop.xlane.xlu1 %1362 }
 0x342   : > { %v1376_v11 = vmul.f32 0.03125, %v1363_v9 }
 0x343   : > { %v1394_v12 = vsub.f32 1.5, %v1393_v8 }
 0x344   : > { %v1811_v13 = vpop.eup %1810  ;;  %v1384_v14 = vadd.f32 1e-05, %v1376_v11 }
 0x345   : > { %v1395_v15 = vmul.f32 %v1809_v63, %v1394_v12  ;;  %v1401_v17 = vmul.f32 %v1811_v13, %v1383_v4  ;;  %vm1407_vm14 = vweird.f32 %v1811_v13 }
 0x346   : > { %1812 = vrsqrt.f32 %v1384_v14  ;;  %vm1408_vm0 = vmor %vm1406_vm15, %vm1407_vm14  ;;  %vm1416_vm2 = vweird.f32 %v1384_v14 }
 0x347   : > { %v1399_v20 = vsel %vm1398_vm13, %v1809_v63, %v1395_v15  ;;  %v1402_v21 = vmul.f32 %v1811_v13, %v1401_v17 }
 0x348   : > { %v1470_v22 = vmul.f32 %v1399_v20, %v2323_v30 }
 0x349   : > { %v1403_v23 = vmul.f32 0.5, %v1402_v21  ;;  %v1365_v25 = vpop.xlane.xlu2 %1364 }
 0x34a   : > { %v1482_v28 = vmul.f32 %v2359_v19, %v1470_v22  ;;  %v1377_v29 = vmul.f32 0.03125, %v1365_v25 }
 0x34b   : > { %v1404_v31 = vsub.f32 1.5, %v1403_v23 }
 0x34c   : > { %v1813_v32 = vpop.eup %1812  ;;  %v1494_v0 = vadd.f32 %v2364_v61, %v1482_v28  ;;  %v1385_v2 = vadd.f32 1e-05, %v1377_v29 }
 0x34d   : > { %v1405_v33 = vmul.f32 %v1811_v13, %v1404_v31  ;;  %v1411_v34 = vmul.f32 %v1813_v32, %v1384_v14  ;;  %vm1417_vm1 = vweird.f32 %v1813_v32 }
 0x34e   : > { %1502 = vst [vmem:[%s2371_s8] sm:$0xff] %v1494_v0  ;;  %1814 = vrsqrt.f32 %v1385_v2  ;;  %vm1418_vm3 = vmor %vm1416_vm2, %vm1417_vm1  ;;  %vm1426_vm5 = vweird.f32 %v1385_v2 }
 0x34f   : > { %v1409_v30 = vsel %vm1408_vm0, %v1811_v13, %v1405_v33  ;;  %v1412_v35 = vmul.f32 %v1813_v32, %v1411_v34 }
 0x350   : > { %v1471_v10 = vmul.f32 %v1409_v30, %v2327_v27 }
 0x351   : > { %v1413_v39 = vmul.f32 0.5, %v1412_v35  ;;  %v1367_v40 = vpop.xlane.xlu0 %1366 }
 0x352   : > { %v1483_v41 = vmul.f32 %v2359_v19, %v1471_v10  ;;  %v1378_v26 = vmul.f32 0.03125, %v1367_v40 }
 0x353   : > { %v1414_v43 = vsub.f32 1.5, %v1413_v39 }
 0x354   : > { %v1815_v44 = vpop.eup %1814  ;;  %v1495_v7 = vadd.f32 %v2364_v61, %v1483_v41  ;;  %v1386_v45 = vadd.f32 1e-05, %v1378_v26 }
 0x355   : > { %v1415_v46 = vmul.f32 %v1813_v32, %v1414_v43  ;;  %v1421_v36 = vmul.f32 %v1815_v44, %v1385_v2  ;;  %vm1427_vm4 = vweird.f32 %v1815_v44 }
 0x356   : > { %1503 = vst [vmem:[%s2371_s8 + $0x8] sm:$0xff] %v1495_v7  ;;  %1816 = vrsqrt.f32 %v1386_v45  ;;  %vm1428_vm6 = vmor %vm1426_vm5, %vm1427_vm4  ;;  %vm1436_vm8 = vweird.f32 %v1386_v45 }
 0x357   : > { %v1419_v48 = vsel %vm1418_vm3, %v1813_v32, %v1415_v46  ;;  %v1422_v27 = vmul.f32 %v1815_v44, %v1421_v36 }
 0x358   : > { %v1472_v1 = vmul.f32 %v1419_v48, %v2331_v38 }
 0x359   : > { %v1423_v49 = vmul.f32 0.5, %v1422_v27  ;;  %v1369_v16 = vpop.xlane.xlu1 %1368 }
 0x35a   : > { %v1484_v3 = vmul.f32 %v2359_v19, %v1472_v1  ;;  %v1379_v50 = vmul.f32 0.03125, %v1369_v16 }
 0x35b   : > { %v1424_v51 = vsub.f32 1.5, %v1423_v49 }
 0x35c   : > { %v1817_v52 = vpop.eup %1816  ;;  %v1496_v37 = vadd.f32 %v2364_v61, %v1484_v3  ;;  %v1387_v53 = vadd.f32 1e-05, %v1379_v50 }
 0x35d   : > { %v1425_v18 = vmul.f32 %v1815_v44, %v1424_v51  ;;  %v1431_v55 = vmul.f32 %v1817_v52, %v1386_v45  ;;  %vm1437_vm7 = vweird.f32 %v1817_v52 }
 0x35e   : > { %1504 = vst [vmem:[%s2371_s8 + $0x10] sm:$0xff] %v1496_v37  ;;  %1818 = vrsqrt.f32 %v1387_v53  ;;  %vm1438_vm9 = vmor %vm1436_vm8, %vm1437_vm7  ;;  %vm1446_vm11 = vweird.f32 %v1387_v53 }
 0x35f   : > { %v1429_v56 = vsel %vm1428_vm6, %v1815_v44, %v1425_v18  ;;  %v1432_v38 = vmul.f32 %v1817_v52, %v1431_v55 }
 0x360   : > { %v1473_v47 = vmul.f32 %v1429_v56, %v2335_v42 }
 0x361   : > { %v1433_v58 = vmul.f32 0.5, %v1432_v38  ;;  %v1371_v59 = vpop.xlane.xlu2 %1370 }
 0x362   : > { %v1485_v60 = vmul.f32 %v2359_v19, %v1473_v47  ;;  %v1380_v63 = vmul.f32 0.03125, %v1371_v59 }
 0x363   : > { %v1434_v4 = vsub.f32 1.5, %v1433_v58 }
 0x364   : > { %v1819_v5 = vpop.eup %1818  ;;  %v1497_v6 = vadd.f32 %v2364_v61, %v1485_v60  ;;  %v1388_v8 = vadd.f32 1e-05, %v1380_v63 }
 0x365   : > { %v1435_v9 = vmul.f32 %v1817_v52, %v1434_v4  ;;  %v1441_v11 = vmul.f32 %v1819_v5, %v1387_v53  ;;  %vm1447_vm10 = vweird.f32 %v1819_v5 }
 0x366   : > { %1505 = vst [vmem:[%s2371_s8 + $0x18] sm:$0xff] %v1497_v6  ;;  %1820 = vrsqrt.f32 %v1388_v8  ;;  %vm1448_vm12 = vmor %vm1446_vm11, %vm1447_vm10  ;;  %vm1456_vm14 = vweird.f32 %v1388_v8 }
 0x367   : > { %v1439_v12 = vsel %vm1438_vm9, %v1817_v52, %v1435_v9  ;;  %v1442_v42 = vmul.f32 %v1819_v5, %v1441_v11 }
 0x368   : > { %v1474_v13 = vmul.f32 %v1439_v12, %v2339_v62 }
 0x369   : > { %v1443_v14 = vmul.f32 0.5, %v1442_v42  ;;  %v1373_v15 = vpop.xlane.xlu0 %1372 }
 0x36a   : > { %v1486_v17 = vmul.f32 %v2359_v19, %v1474_v13  ;;  %v1381_v20 = vmul.f32 0.03125, %v1373_v15 }
 0x36b   : > { %v1444_v21 = vsub.f32 1.5, %v1443_v14 }
 0x36c   : > { %v1821_v22 = vpop.eup %1820  ;;  %v1498_v23 = vadd.f32 %v2364_v61, %v1486_v17  ;;  %v1389_v25 = vadd.f32 1e-05, %v1381_v20 }
 0x36d   : > { %v1445_v28 = vmul.f32 %v1819_v5, %v1444_v21  ;;  %v1451_v29 = vmul.f32 %v1821_v22, %v1388_v8  ;;  %vm1457_vm13 = vweird.f32 %v1821_v22 }
 0x36e   : > { %1506 = vst [vmem:[%s2371_s8 + $0x20] sm:$0xff] %v1498_v23  ;;  %1822 = vrsqrt.f32 %v1389_v25  ;;  %vm1458_vm15 = vmor %vm1456_vm14, %vm1457_vm13  ;;  %vm1466_vm1 = vweird.f32 %v1389_v25 }
 0x36f   : > { %v1449_v31 = vsel %vm1448_vm12, %v1819_v5, %v1445_v28  ;;  %v1452_v62 = vmul.f32 %v1821_v22, %v1451_v29 }
 0x370   : > { %v1475_v32 = vmul.f32 %v1449_v31, %v2343_v57 }
 0x371   : > { %v1453_v0 = vmul.f32 0.5, %v1452_v62 }
 0x372   : > { %v1487_v2 = vmul.f32 %v2359_v19, %v1475_v32 }
 0x373   : > { %v1454_v33 = vsub.f32 1.5, %v1453_v0 }
 0x374   : > { %v1823_v34 = vpop.eup %1822  ;;  %v1499_v30 = vadd.f32 %v2364_v61, %v1487_v2 }
 0x375   : > { %v1455_v35 = vmul.f32 %v1821_v22, %v1454_v33  ;;  %v1461_v10 = vmul.f32 %v1823_v34, %v1389_v25  ;;  %vm1467_vm0 = vweird.f32 %v1823_v34 }
 0x376   : > { %1507 = vst [vmem:[%s2371_s8 + $0x28] sm:$0xff] %v1499_v30  ;;  %vm1468_vm2 = vmor %vm1466_vm1, %vm1467_vm0 }
 0x377   : > { %v1459_v39 = vsel %vm1458_vm15, %v1821_v22, %v1455_v35  ;;  %v1462_v40 = vmul.f32 %v1823_v34, %v1461_v10 }
 0x378   : > { %v1476_v57 = vmul.f32 %v1459_v39, %v2347_v24 }
 0x379   : > { %v1463_v41 = vmul.f32 0.5, %v1462_v40 }
 0x37a   : > { %v1488_v26 = vmul.f32 %v2359_v19, %v1476_v57 }
 0x37b   : > { %v1464_v43 = vsub.f32 1.5, %v1463_v41 }
 0x37c   : > { %v1500_v44 = vadd.f32 %v2364_v61, %v1488_v26 }
 0x37d   : > { %v1465_v7 = vmul.f32 %v1823_v34, %v1464_v43 }
 0x37e   : > { %1508 = vst [vmem:[%s2371_s8 + $0x30] sm:$0xff] %v1500_v44 }
 0x37f   : > { %v1469_v24 = vsel %vm1468_vm2, %v1823_v34, %v1465_v7 }
 0x380   : > { %v1477_v45 = vmul.f32 %v1469_v24, %v2351_v54 }
 0x382   : > { %v1489_v46 = vmul.f32 %v2359_v19, %v1477_v45 }
 0x384   : > { %v1501_v36 = vadd.f32 %v2364_v61, %v1489_v46 }
 0x386   : > { %1509 = vst [vmem:[%s2371_s8 + $0x38] sm:$0xff] %v1501_v36 }
 0x387   : > { %1851 = shalt.err (!%p1848_p3)
}
 0x388   : > { %s1890_s20 = smov 128   ;;  %s1891_s8 = smov 8  }
 0x389   : > { %1761 = dma.vmem_to_hbm [thread:$0]  (%p1970_p5), %s1524_s18, 1024, %s1526_s28, %s1511_s19, %s1890_s20, %s1890_s20, %s1891_s8  }
 0x38a PF: > { %p1767_p4 = scmp.ge.s32.totalorder %s1886_s27, 2  ;;  %s1540_s13 = sand.u32 1, %s1874_s24  }
 0x38b   : > { %s1541_s15 = scalar_lea.sflag [#allocation4], %s1540_s13 }
 0x38c   : > { %p1764_p7 = pnand %p1767_p4, %p1974_p6 }
 0x38e   : > { %p1765_p8 = pneg %p1764_p7 }
 0x390   : > { %1869 = dma.done.wait (%p1765_p8), %s1541_s15, 1024  }
 0x391   : > { %1871 = vsyncadd (%p1765_p8), %s1541_s15, 4294966272  ;;  %p17_p9 = scmp.ge.s32.totalorder %s1957_s30, 4   ;;  %s2452_s24 = smov %s1878_s25 }
 0x392   : > { %s2453_s25 = smov %s1882_s26  ;;  %s2454_s26 = smov %s1968_s10 }
 0x393   : > { %s2455_s27 = smov %s1957_s30  ;;  %19 = sbr.rel (!%p17_p9) target bundleno = 3 (0x3), region = 84 }
 0x398   :  { %1547 = vsyncpa [#allocation4], 1 }
 0x399   :  { %1549 = vsyncpa [#allocation4 + $0x1], 1 }

</bundles_post_ra>
